<compile_context>
chip_gen: v7x
topology: tpu7x:2x2x1
jax: 0.10.0
libtpu: 0.0.40
codegen_flags: <defaults>
</compile_context>

<pallas_src>
import jax
import jax.numpy as jnp
from jax.experimental import pallas as pl
from jax.experimental.pallas import tpu as pltpu


def make_trainer_kernel(out_dim, row_tile, lambd0, lambd1, lambd2,
                        w_loss1, w_loss2):
    """Kernel body with loss-weight scalars, cfg[-1] and the row tile baked in."""
    D = out_dim
    TN = row_tile

    def kernel(x_ref, adj0_ref, adj1_ref, wA_ref, bA_ref, wB_ref, bB_ref,
               loss_ref, hab_ref, gram_ref):
        f32 = jnp.float32
        bf16 = jnp.bfloat16
        i = pl.program_id(0)

        # --- step 0: fused twin MLP for ALL rows -> resident bf16 scratch ---
        @pl.when(i == 0)
        def _init():
            # layer 1: [N,FT]@[FT,2H], bias+ReLU in f32
            h12 = jnp.dot(x_ref[...], wA_ref[...], preferred_element_type=f32)
            h12 = jnp.maximum(h12 + bA_ref[...], 0.0)
            # layer 2 (block-diag weights): [N,2H]@[2H,2D] = [h_a | h_a_1]
            hab = jnp.dot(h12.astype(bf16), wB_ref[...],
                          preferred_element_type=f32) + bB_ref[...]
            hab_ref[...] = hab.astype(bf16)
            gram_ref[...] = jnp.zeros_like(gram_ref)

        hab_full = hab_ref[...]
        h_a = hab_full[:, :D]          # [N, D] bf16
        h_a_1 = hab_full[:, D:]        # [N, D] bf16

        # --- graph propagation for this row tile (bf16 MXU, f32 accumulate) ---
        hp0 = jnp.dot(adj0_ref[...], h_a, preferred_element_type=f32)    # [TN,D]
        hp1 = jnp.dot(adj1_ref[...], h_a_1, preferred_element_type=f32)  # [TN,D]

        # matching rows of [h_a | h_a_1] for the c0 / c1 correlations
        row0 = pl.multiple_of(i * TN, TN)
        hab_t = hab_ref[pl.ds(row0, TN), :]                              # [TN,2D]

        # --- one 128-lane Gram matmul accumulates all 3 correlations ---
        H = jnp.concatenate([hp0.astype(bf16), hp1.astype(bf16), hab_t],
                            axis=1)                                      # [TN,4D]
        dn = (((0,), (0,)), ((), ()))  # H^T @ H without explicit transpose
        gram_ref[...] += jax.lax.dot_general(H, H, dn,
                                             preferred_element_type=f32)

        # --- last step: read the 3 static 32x32 blocks, emit scalar loss ---
        @pl.when(i == pl.num_programs(0) - 1)
        def _finalize():
            G = gram_ref[...]
            c = G[D:2 * D, 0:D]            # h_p1^T @ h_p0
            c0 = G[0:D, 2 * D:3 * D]       # h_p0^T @ h_a
            c1 = G[D:2 * D, 3 * D:4 * D]   # h_p1^T @ h_a_1

            ri = jax.lax.broadcasted_iota(jnp.int32, (D, D), 0)
            ci = jax.lax.broadcasted_iota(jnp.int32, (D, D), 1)
            is_diag = ri == ci

            def bt_loss(cm, lambd):
                # single select + single reduction per correlation matrix
                contrib = jnp.where(is_diag, (cm - 1.0) ** 2, lambd * (cm * cm))
                return jnp.sum(contrib)

            loss_ref[0, 0] = (bt_loss(c, lambd0)
                              + w_loss1 * bt_loss(c0, lambd1)
                              + w_loss2 * bt_loss(c1, lambd2))

    return kernel


def _pick_row_tile(n, max_tile_bytes=4 << 20):
    """Largest row tile: whole N if the bf16 adj fits cheaply, else a ~4MiB
    (TN, N) row tile that divides N and is a multiple of 8 sublanes."""
    if 2 * n * n <= max_tile_bytes or n <= 8:
        return n
    target = max(8, max_tile_bytes // (2 * n))
    tn = (min(target, n) // 8) * 8
    while tn > 8 and n % tn != 0:
        tn -= 8
    return tn if (tn >= 8 and n % tn == 0) else n


def trainer_forward_pallas(x, adj0, adj1, params, args):
    """Wrapper: packs the twin MLP weights, casts to bf16, calls the kernel."""
    bf16, f32 = jnp.bfloat16, jnp.float32
    N, FT = x.shape
    HID = params["w1a"].shape[1]
    D = params["w1b"].shape[1]

    # layer-1: concat along out dim -> [FT, 2H]; layer-2: block-diag -> [2H, 2D]
    wA = jnp.concatenate([params["w1a"], params["w2a"]], axis=1).astype(bf16)
    bA = jnp.concatenate([params["b1a"], params["b2a"]], axis=1).astype(f32)
    zblk = jnp.zeros((HID, D), f32)
    wB = jnp.concatenate(
        [jnp.concatenate([params["w1b"], zblk], axis=1),
         jnp.concatenate([zblk, params["w2b"]], axis=1)], axis=0).astype(bf16)
    bB = jnp.concatenate([params["b1b"], params["b2b"]], axis=1).astype(f32)

    TN = _pick_row_tile(N)
    grid = (N // TN,)

    kernel = make_trainer_kernel(D, TN, args["lambd0"], args["lambd1"],
                                 args["lambd2"], args["w_loss1"],
                                 args["w_loss2"])

    in_specs = [
        pl.BlockSpec((N, FT), lambda i: (0, 0)),        # x (resident)
        pl.BlockSpec((TN, N), lambda i: (i, 0)),        # adj0 row tile
        pl.BlockSpec((TN, N), lambda i: (i, 0)),        # adj1 row tile
        pl.BlockSpec(wA.shape, lambda i: (0, 0)),
        pl.BlockSpec(bA.shape, lambda i: (0, 0)),
        pl.BlockSpec(wB.shape, lambda i: (0, 0)),
        pl.BlockSpec(bB.shape, lambda i: (0, 0)),
    ]

    loss = pl.pallas_call(
        kernel,
        out_shape=jax.ShapeDtypeStruct((1, 1), jnp.float32),
        grid=grid,
        in_specs=in_specs,
        out_specs=pl.BlockSpec(memory_space=pltpu.MemorySpace.SMEM),
        scratch_shapes=[pltpu.VMEM((N, 2 * D), bf16),            # [h_a | h_a_1]
                        pltpu.VMEM((4 * D, 4 * D), jnp.float32)],  # Gram acc
        compiler_params=pltpu.CompilerParams(
            dimension_semantics=("arbitrary",)),
    )(x.astype(bf16), adj0.astype(bf16), adj1.astype(bf16), wA, bA, wB, bB)
    return loss[0, 0]


def _bt(cm, lambd):
    on = jnp.sum((jnp.diagonal(cm) - 1.0) ** 2)
    off = jnp.sum(cm ** 2) - jnp.sum(jnp.diagonal(cm) ** 2)
    return on + lambd * off


def trainer_forward_ref(x, adj0, adj1, params, args):
    """Pure-f32 reference implementing the original PyTorch forward semantics."""
    h1 = jnp.maximum(x @ params["w1a"] + params["b1a"], 0.0)
    h_a = h1 @ params["w1b"] + params["b1b"]
    h2 = jnp.maximum(x @ params["w2a"] + params["b2a"], 0.0)
    h_a_1 = h2 @ params["w2b"] + params["b2b"]
    h_p0 = adj0 @ h_a
    h_p1 = adj1 @ h_a_1
    c, c0, c1 = h_p1.T @ h_p0, h_p0.T @ h_a, h_p1.T @ h_a_1
    return (_bt(c, args["lambd0"])
            + args["w_loss1"] * _bt(c0, args["lambd1"])
            + args["w_loss2"] * _bt(c1, args["lambd2"]))


def trainer_forward_ref_bf16(x, adj0, adj1, params, args):
    """Reference with the same bf16-input / f32-accumulate numerics as the kernel."""
    bf16, f32 = jnp.bfloat16, jnp.float32
    xb = x.astype(bf16)
    a0, a1 = adj0.astype(bf16), adj1.astype(bf16)

    def mlp(wa, ba, wb, bb):
        h = jnp.maximum(jnp.dot(xb, wa.astype(bf16),
                                preferred_element_type=f32) + ba, 0.0)
        return (jnp.dot(h.astype(bf16), wb.astype(bf16),
                        preferred_element_type=f32) + bb).astype(bf16)

    h_a = mlp(params["w1a"], params["b1a"], params["w1b"], params["b1b"])
    h_a_1 = mlp(params["w2a"], params["b2a"], params["w2b"], params["b2b"])
    h_p0 = jnp.dot(a0, h_a, preferred_element_type=f32).astype(bf16)
    h_p1 = jnp.dot(a1, h_a_1, preferred_element_type=f32).astype(bf16)

    def corr(u, v):
        return jax.lax.dot_general(u, v, (((0,), (0,)), ((), ())),
                                   preferred_element_type=f32)

    c, c0, c1 = corr(h_p1, h_p0), corr(h_p0, h_a), corr(h_p1, h_a_1)
    return (_bt(c, args["lambd0"])
            + args["w_loss1"] * _bt(c0, args["lambd1"])
            + args["w_loss2"] * _bt(c1, args["lambd2"]))


def init_params(key, ft_size, hidden, out_dim):
    """Deterministic PyTorch-Linear-style init: U(-1/sqrt(fan_in), 1/sqrt(fan_in))."""
    ks = jax.random.split(key, 8)

    def lin(kw, kb, fan_in, fan_out):
        bound = 1.0 / jnp.sqrt(fan_in)
        w = jax.random.uniform(kw, (fan_in, fan_out), jnp.float32, -bound, bound)
        b = jax.random.uniform(kb, (1, fan_out), jnp.float32, -bound, bound)
        return w, b

    w1a, b1a = lin(ks[0], ks[1], ft_size, hidden)
    w1b, b1b = lin(ks[2], ks[3], hidden, out_dim)
    w2a, b2a = lin(ks[4], ks[5], ft_size, hidden)
    w2b, b2b = lin(ks[6], ks[7], hidden, out_dim)
    return dict(w1a=w1a, b1a=b1a, w1b=w1b, b1b=b1b,
                w2a=w2a, b2a=b2a, w2b=w2b, b2b=b2b)


if __name__ == "__main__":
    # args: length=2, dense adj, default loss branch, dropout=0 (identity).
    # TODO(synk): 'nowhite' / ins / fea loss branches need ZCA whitening (SVD /
    # Cholesky) and the sparse path needs spmm; only the default dense
    # Barlow-Twins branch is implemented here.
    args = dict(lambd0=0.0051, lambd1=0.0051, lambd2=0.0051,
                w_loss1=0.5, w_loss2=0.3)

    N, FT, HID, D = 256, 32, 64, 32  # nodes, ft_size, cfg=[64, 32]

    key = jax.random.PRNGKey(0)
    kx, ka0, ka1, kp = jax.random.split(key, 4)

    x = jax.random.normal(kx, (N, FT), jnp.float32)
    # dense "adjacency" matrices (row-scaled random, deterministic)
    adj0 = jax.random.uniform(ka0, (N, N), jnp.float32) / N
    adj1 = jax.random.uniform(ka1, (N, N), jnp.float32) / N

    params = init_params(kp, FT, HID, D)

    loss_pallas = jax.block_until_ready(
        trainer_forward_pallas(x, adj0, adj1, params, args))
    loss_bf16 = jax.block_until_ready(
        trainer_forward_ref_bf16(x, adj0, adj1, params, args))
    loss_f32 = jax.block_until_ready(
        trainer_forward_ref(x, adj0, adj1, params, args))

    # strict: kernel vs matched-precision (bf16-input / f32-accumulate) reference
    assert jnp.allclose(loss_pallas, loss_bf16, rtol=1e-3, atol=1e-3), (
        loss_pallas, loss_bf16)
    # loose: bf16 kernel vs the original pure-f32 semantics
    assert jnp.allclose(loss_pallas, loss_f32, rtol=2e-2, atol=1e-1), (
        loss_pallas, loss_f32)
    print("KERNEL_OK")
</pallas_src>

<mosaic_0001>
module attributes {stable_mosaic.version = 11 : i64} {
  func.func @kernel(%arg0: i32, %arg1: memref<256x32xbf16, #tpu.memory_space<vmem>>, %arg2: memref<256x256xbf16, #tpu.memory_space<vmem>>, %arg3: memref<256x256xbf16, #tpu.memory_space<vmem>>, %arg4: memref<32x128xbf16, #tpu.memory_space<vmem>>, %arg5: memref<1x128xf32, #tpu.memory_space<vmem>>, %arg6: memref<128x64xbf16, #tpu.memory_space<vmem>>, %arg7: memref<1x64xf32, #tpu.memory_space<vmem>>, %arg8: memref<1x1xf32, #tpu.memory_space<smem>>, %arg9: memref<256x64xbf16, #tpu.memory_space<vmem>>, %arg10: memref<128x128xf32, #tpu.memory_space<vmem>>) attributes {dimension_semantics = [#tpu.dimension_semantics<arbitrary>], iteration_bounds = array<i64: 1>, scalar_prefetch = 0 : i64, scratch_operands = 2 : i64, tpu.core_type = #tpu.core_type<tc>, window_params = [{pipeline_mode = #tpu.pipeline_mode<synchronous>, transform_indices = @transform_0, window_bounds = array<i64: 256, 32>}, {transform_indices = @transform_1, window_bounds = array<i64: 256, 256>}, {transform_indices = @transform_2, window_bounds = array<i64: 256, 256>}, {pipeline_mode = #tpu.pipeline_mode<synchronous>, transform_indices = @transform_3, window_bounds = array<i64: 32, 128>}, {pipeline_mode = #tpu.pipeline_mode<synchronous>, transform_indices = @transform_4, window_bounds = array<i64: 1, 128>}, {pipeline_mode = #tpu.pipeline_mode<synchronous>, transform_indices = @transform_5, window_bounds = array<i64: 128, 64>}, {pipeline_mode = #tpu.pipeline_mode<synchronous>, transform_indices = @transform_6, window_bounds = array<i64: 1, 64>}, {transform_indices = @transform_7, window_bounds = array<i64: 1, 1>}]} {
    %c0_i32 = arith.constant 0 : i32
    %0 = arith.cmpi eq, %arg0, %c0_i32 : i32
    %1 = arith.extui %0 : i1 to i32
    %c0_i32_0 = arith.constant 0 : i32
    %2 = arith.cmpi ne, %1, %c0_i32_0 : i32
    scf.if %2 {
      %c0_15 = arith.constant 0 : index
      %c0_16 = arith.constant 0 : index
      %24 = vector.load %arg1[%c0_15, %c0_16] : memref<256x32xbf16, #tpu.memory_space<vmem>>, vector<256x32xbf16>
      %c0_17 = arith.constant 0 : index
      %c0_18 = arith.constant 0 : index
      %25 = vector.load %arg4[%c0_17, %c0_18] : memref<32x128xbf16, #tpu.memory_space<vmem>>, vector<32x128xbf16>
      %cst_19 = arith.constant dense<0.000000e+00> : vector<256x128xf32>
      %26 = tpu.matmul %24, %25, %cst_19 {dimension_numbers = #tpu.dot_dimension_numbers<[1], [0], [0], [1], [0, 0, 1, 1], [], []>} : vector<256x32xbf16>, vector<32x128xbf16>, vector<256x128xf32> -> vector<256x128xf32>
      %c0_20 = arith.constant 0 : index
      %c0_21 = arith.constant 0 : index
      %27 = vector.load %arg5[%c0_20, %c0_21] : memref<1x128xf32, #tpu.memory_space<vmem>>, vector<1x128xf32>
      %28 = vector.broadcast %27 : vector<1x128xf32> to vector<256x128xf32>
      %29 = arith.addf %26, %28 : vector<256x128xf32>
      %cst_22 = arith.constant 0.000000e+00 : f32
      %30 = vector.broadcast %cst_22 : f32 to vector<256x128xf32>
      %31 = arith.maximumf %29, %30 : vector<256x128xf32>
      %32 = arith.truncf %31 : vector<256x128xf32> to vector<256x128xbf16>
      %c0_23 = arith.constant 0 : index
      %c0_24 = arith.constant 0 : index
      %33 = vector.load %arg6[%c0_23, %c0_24] : memref<128x64xbf16, #tpu.memory_space<vmem>>, vector<128x64xbf16>
      %cst_25 = arith.constant dense<0.000000e+00> : vector<256x64xf32>
      %34 = tpu.matmul %32, %33, %cst_25 {dimension_numbers = #tpu.dot_dimension_numbers<[1], [0], [0], [1], [0, 0, 1, 1], [], []>} : vector<256x128xbf16>, vector<128x64xbf16>, vector<256x64xf32> -> vector<256x64xf32>
      %c0_26 = arith.constant 0 : index
      %c0_27 = arith.constant 0 : index
      %35 = vector.load %arg7[%c0_26, %c0_27] : memref<1x64xf32, #tpu.memory_space<vmem>>, vector<1x64xf32>
      %36 = vector.broadcast %35 : vector<1x64xf32> to vector<256x64xf32>
      %37 = arith.addf %34, %36 : vector<256x64xf32>
      %38 = arith.truncf %37 : vector<256x64xf32> to vector<256x64xbf16>
      %c0_28 = arith.constant 0 : index
      %c0_29 = arith.constant 0 : index
      %39 = vector.load %arg9[%c0_28, %c0_29] : memref<256x64xbf16, #tpu.memory_space<vmem>>, vector<256x64xbf16>
      tpu.vector_store %arg9[%c0_28, %c0_29], %38 {strides = array<i32>} : memref<256x64xbf16, #tpu.memory_space<vmem>>, vector<256x64xbf16>,
      %cst_30 = arith.constant 0.000000e+00 : f32
      %40 = vector.broadcast %cst_30 : f32 to vector<128x128xf32>
      %c0_31 = arith.constant 0 : index
      %c0_32 = arith.constant 0 : index
      %41 = vector.load %arg10[%c0_31, %c0_32] : memref<128x128xf32, #tpu.memory_space<vmem>>, vector<128x128xf32>
      tpu.vector_store %arg10[%c0_31, %c0_32], %40 {strides = array<i32>} : memref<128x128xf32, #tpu.memory_space<vmem>>, vector<128x128xf32>,
    } else {
    }
    %c0 = arith.constant 0 : index
    %c0_1 = arith.constant 0 : index
    %3 = vector.load %arg9[%c0, %c0_1] : memref<256x64xbf16, #tpu.memory_space<vmem>>, vector<256x64xbf16>
    %4 = vector.extract_strided_slice %3 {offsets = [0, 0], sizes = [256, 32], strides = [1, 1]} : vector<256x64xbf16> to vector<256x32xbf16>
    %5 = vector.extract_strided_slice %3 {offsets = [0, 32], sizes = [256, 32], strides = [1, 1]} : vector<256x64xbf16> to vector<256x32xbf16>
    %c0_2 = arith.constant 0 : index
    %c0_3 = arith.constant 0 : index
    %6 = vector.load %arg2[%c0_2, %c0_3] : memref<256x256xbf16, #tpu.memory_space<vmem>>, vector<256x256xbf16>
    %cst = arith.constant dense<0.000000e+00> : vector<256x32xf32>
    %7 = tpu.matmul %6, %4, %cst {dimension_numbers = #tpu.dot_dimension_numbers<[1], [0], [0], [1], [0, 0, 1, 1], [], []>} : vector<256x256xbf16>, vector<256x32xbf16>, vector<256x32xf32> -> vector<256x32xf32>
    %c0_4 = arith.constant 0 : index
    %c0_5 = arith.constant 0 : index
    %8 = vector.load %arg3[%c0_4, %c0_5] : memref<256x256xbf16, #tpu.memory_space<vmem>>, vector<256x256xbf16>
    %cst_6 = arith.constant dense<0.000000e+00> : vector<256x32xf32>
    %9 = tpu.matmul %8, %5, %cst_6 {dimension_numbers = #tpu.dot_dimension_numbers<[1], [0], [0], [1], [0, 0, 1, 1], [], []>} : vector<256x256xbf16>, vector<256x32xbf16>, vector<256x32xf32> -> vector<256x32xf32>
    %c256_i32 = arith.constant 256 : i32
    %10 = arith.muli %arg0, %c256_i32 : i32
    %11 = tpu.assume_multiple %10, 256 : i32
    %12 = arith.index_cast %11 : i32 to index
    %c0_7 = arith.constant 0 : index
    %13 = vector.load %arg9[%12, %c0_7] : memref<256x64xbf16, #tpu.memory_space<vmem>>, vector<256x64xbf16>
    %14 = arith.truncf %7 : vector<256x32xf32> to vector<256x32xbf16>
    %15 = arith.truncf %9 : vector<256x32xf32> to vector<256x32xbf16>
    %16 = tpu.concatenate %14, %15, %13 in 1 : vector<256x32xbf16>, vector<256x32xbf16>, vector<256x64xbf16> -> vector<256x128xbf16>
    %c0_8 = arith.constant 0 : index
    %c0_9 = arith.constant 0 : index
    %17 = vector.load %arg10[%c0_8, %c0_9] : memref<128x128xf32, #tpu.memory_space<vmem>>, vector<128x128xf32>
    %cst_10 = arith.constant dense<0.000000e+00> : vector<128x128xf32>
    %18 = tpu.matmul %16, %16, %cst_10 {dimension_numbers = #tpu.dot_dimension_numbers<[0], [0], [1], [1], [0, 1, 1, 1], [], []>} : vector<256x128xbf16>, vector<256x128xbf16>, vector<128x128xf32> -> vector<128x128xf32>
    %19 = arith.addf %17, %18 : vector<128x128xf32>
    %c0_11 = arith.constant 0 : index
    %c0_12 = arith.constant 0 : index
    %20 = vector.load %arg10[%c0_11, %c0_12] : memref<128x128xf32, #tpu.memory_space<vmem>>, vector<128x128xf32>
    tpu.vector_store %arg10[%c0_11, %c0_12], %19 {strides = array<i32>} : memref<128x128xf32, #tpu.memory_space<vmem>>, vector<128x128xf32>,
    %c0_i32_13 = arith.constant 0 : i32
    %21 = arith.cmpi eq, %arg0, %c0_i32_13 : i32
    %22 = arith.extui %21 : i1 to i32
    %c0_i32_14 = arith.constant 0 : i32
    %23 = arith.cmpi ne, %22, %c0_i32_14 : i32
    scf.if %23 {
      %c0_15 = arith.constant 0 : index
      %c0_16 = arith.constant 0 : index
      %24 = vector.load %arg10[%c0_15, %c0_16] : memref<128x128xf32, #tpu.memory_space<vmem>>, vector<128x128xf32>
      %25 = vector.extract_strided_slice %24 {offsets = [32, 0], sizes = [32, 32], strides = [1, 1]} : vector<128x128xf32> to vector<32x32xf32>
      %26 = vector.extract_strided_slice %24 {offsets = [0, 64], sizes = [32, 32], strides = [1, 1]} : vector<128x128xf32> to vector<32x32xf32>
      %27 = vector.extract_strided_slice %24 {offsets = [32, 96], sizes = [32, 32], strides = [1, 1]} : vector<128x128xf32> to vector<32x32xf32>
      %28 = tpu.iota {dimensions = array<i32: 0>} : vector<32x32xi32>
      %29 = tpu.iota {dimensions = array<i32: 1>} : vector<32x32xi32>
      %30 = arith.cmpi eq, %28, %29 : vector<32x32xi32>
      %cst_17 = arith.constant 1.000000e+00 : f32
      %31 = vector.broadcast %cst_17 : f32 to vector<32x32xf32>
      %32 = arith.subf %25, %31 : vector<32x32xf32>
      %33 = arith.mulf %32, %32 : vector<32x32xf32>
      %34 = arith.mulf %25, %25 : vector<32x32xf32>
      %cst_18 = arith.constant 5.100000e-03 : f32
      %35 = vector.broadcast %cst_18 : f32 to vector<32x32xf32>
      %36 = arith.mulf %35, %34 : vector<32x32xf32>
      %37 = arith.select %30, %33, %36 : vector<32x32xi1>, vector<32x32xf32>
      %38 = vector.shape_cast %37 : vector<32x32xf32> to vector<1x32x32xf32>
      %cst_19 = arith.constant dense<0.000000e+00> : vector<1xf32>
      %39 = vector.multi_reduction <add>, %38, %cst_19 [1, 2] : vector<1x32x32xf32> to vector<1xf32>
      %40 = vector.shape_cast %39 : vector<1xf32> to vector<1x1x1xf32>
      %41 = vector.extract %40[0, 0, 0] : f32 from vector<1x1x1xf32>
      %cst_20 = arith.constant 1.000000e+00 : f32
      %42 = vector.broadcast %cst_20 : f32 to vector<32x32xf32>
      %43 = arith.subf %26, %42 : vector<32x32xf32>
      %44 = arith.mulf %43, %43 : vector<32x32xf32>
      %45 = arith.mulf %26, %26 : vector<32x32xf32>
      %cst_21 = arith.constant 5.100000e-03 : f32
      %46 = vector.broadcast %cst_21 : f32 to vector<32x32xf32>
      %47 = arith.mulf %46, %45 : vector<32x32xf32>
      %48 = arith.select %30, %44, %47 : vector<32x32xi1>, vector<32x32xf32>
      %49 = vector.shape_cast %48 : vector<32x32xf32> to vector<1x32x32xf32>
      %cst_22 = arith.constant dense<0.000000e+00> : vector<1xf32>
      %50 = vector.multi_reduction <add>, %49, %cst_22 [1, 2] : vector<1x32x32xf32> to vector<1xf32>
      %51 = vector.shape_cast %50 : vector<1xf32> to vector<1x1x1xf32>
      %52 = vector.extract %51[0, 0, 0] : f32 from vector<1x1x1xf32>
      %cst_23 = arith.constant 5.000000e-01 : f32
      %53 = arith.mulf %cst_23, %52 : f32
      %54 = arith.addf %41, %53 : f32
      %cst_24 = arith.constant 1.000000e+00 : f32
      %55 = vector.broadcast %cst_24 : f32 to vector<32x32xf32>
      %56 = arith.subf %27, %55 : vector<32x32xf32>
      %57 = arith.mulf %56, %56 : vector<32x32xf32>
      %58 = arith.mulf %27, %27 : vector<32x32xf32>
      %cst_25 = arith.constant 5.100000e-03 : f32
      %59 = vector.broadcast %cst_25 : f32 to vector<32x32xf32>
      %60 = arith.mulf %59, %58 : vector<32x32xf32>
      %61 = arith.select %30, %57, %60 : vector<32x32xi1>, vector<32x32xf32>
      %62 = vector.shape_cast %61 : vector<32x32xf32> to vector<1x32x32xf32>
      %cst_26 = arith.constant dense<0.000000e+00> : vector<1xf32>
      %63 = vector.multi_reduction <add>, %62, %cst_26 [1, 2] : vector<1x32x32xf32> to vector<1xf32>
      %64 = vector.shape_cast %63 : vector<1xf32> to vector<1x1x1xf32>
      %65 = vector.extract %64[0, 0, 0] : f32 from vector<1x1x1xf32>
      %cst_27 = arith.constant 3.000000e-01 : f32
      %66 = arith.mulf %cst_27, %65 : f32
      %67 = arith.addf %54, %66 : f32
      %c0_28 = arith.constant 0 : index
      %c0_29 = arith.constant 0 : index
      %68 = memref.load %arg8[%c0_28, %c0_29] : memref<1x1xf32, #tpu.memory_space<smem>>
      memref.store %67, %arg8[%c0_28, %c0_29] : memref<1x1xf32, #tpu.memory_space<smem>>
    } else {
    }
    return
  }
  func.func @transform_0(%arg0: i32) -> (i32, i32) {
    %c0_i32 = arith.constant 0 : i32
    %c0_i32_0 = arith.constant 0 : i32
    %c0_i32_1 = arith.constant 0 : i32
    return %c0_i32, %c0_i32_0 : i32, i32
  }
  func.func @transform_1(%arg0: i32) -> (i32, i32) {
    %c0_i32 = arith.constant 0 : i32
    %c0_i32_0 = arith.constant 0 : i32
    return %arg0, %c0_i32 : i32, i32
  }
  func.func @transform_2(%arg0: i32) -> (i32, i32) {
    %c0_i32 = arith.constant 0 : i32
    %c0_i32_0 = arith.constant 0 : i32
    return %arg0, %c0_i32 : i32, i32
  }
  func.func @transform_3(%arg0: i32) -> (i32, i32) {
    %c0_i32 = arith.constant 0 : i32
    %c0_i32_0 = arith.constant 0 : i32
    %c0_i32_1 = arith.constant 0 : i32
    return %c0_i32, %c0_i32_0 : i32, i32
  }
  func.func @transform_4(%arg0: i32) -> (i32, i32) {
    %c0_i32 = arith.constant 0 : i32
    %c0_i32_0 = arith.constant 0 : i32
    %c0_i32_1 = arith.constant 0 : i32
    return %c0_i32, %c0_i32_0 : i32, i32
  }
  func.func @transform_5(%arg0: i32) -> (i32, i32) {
    %c0_i32 = arith.constant 0 : i32
    %c0_i32_0 = arith.constant 0 : i32
    %c0_i32_1 = arith.constant 0 : i32
    return %c0_i32, %c0_i32_0 : i32, i32
  }
  func.func @transform_6(%arg0: i32) -> (i32, i32) {
    %c0_i32 = arith.constant 0 : i32
    %c0_i32_0 = arith.constant 0 : i32
    %c0_i32_1 = arith.constant 0 : i32
    return %c0_i32, %c0_i32_0 : i32, i32
  }
  func.func @transform_7(%arg0: i32) -> (i32, i32) {
    %c0_i32 = arith.constant 0 : i32
    %c0_i32_0 = arith.constant 0 : i32
    %c0_i32_1 = arith.constant 0 : i32
    return %c0_i32, %c0_i32_0 : i32, i32
  }
}

</mosaic_0001>

<bundles_post_ra>
// kernel: tpu_custom_call.1
= control target key start
LH: loop header
LB: loop body
LE: loop exit
PB: predicated region body
PF: predicated region fallthrough
CT: control target
= control target key end

     0   :  { %12 = vsyncpa [#allocation5], 0  ;;  %s3597_s0 = inlined_call_operand.vmem [shape: bf16[256,32], index: 0, kind: input, shape index: {}]   ;;  %s3598_s1 = inlined_call_operand.vmem [shape: bf16[256,256], index: 1, kind: input, shape index: {}]   ;;  %s3599_s2 = inlined_call_operand.hbm [shape: bf16[256,256], index: 2, kind: input, shape index: {}]   ;;  %s3600_s3 = inlined_call_operand.hbm [shape: bf16[32,128], index: 3, kind: input, shape index: {}]   ;;  %s3601_s4 = inlined_call_operand.vmem [shape: f32[1,128], index: 4, kind: input, shape index: {}]   ;;  %s3602_s5 = inlined_call_operand.vmem [shape: bf16[128,64], index: 5, kind: input, shape index: {}]   ;;  %s3603_s6 = inlined_call_operand.vmem [shape: f32[1,64], index: 6, kind: input, shape index: {}]   ;;  %s3604_s7 = inlined_call_operand.hbm [shape: f32[1,1], index: 7, kind: output, shape index: {}]  }
   0x1   :  { %13 = vsyncpa [#allocation8], 0 }
   0x2   :  { %14 = vsyncpa [#allocation6], 0  ;;  %s2876_s24 = smov [#allocation4]   ;;  %s2816_s28 = scalar_lea.hbm %s3599_s2, 4096 }
   0x3   :  { %s24_s25 = sshll.u32 %s2876_s24, 4  ;;  %p2817_p0 = scmp.ne.s32.totalorder %s3599_s2, %s2816_s28  ;;  %s25_s25 = int_to_ptr.vmem [resolvable:$true] %s24_s25 }
   0x4   :  { %p2820_p1 = scmp.lt.u32.totalorder %s2816_s28, %s3599_s2 }
   0x6   :  { %p2822_p2 = pnand %p2820_p1, %p2817_p0 }
   0x8   :  { %2825 = shalt.err (!%p2822_p2)
}
   0x9   :  { %s2826_s10 = scalar_lea.vmem %s25_s25, 4096  ;;  %p2831_p4 = scmp.lt.s32.totalorder %s25_s25, %s25_s25 }
   0xa   :  { %p2827_p3 = scmp.ne.s32.totalorder %s25_s25, %s2826_s10  ;;  %p2832_p5 = scmp.lt.s32.totalorder %s2826_s10, %s2826_s10 }
   0xc   :  { %p2833_p6 = por %p2832_p5, %p2831_p4 }
   0xe   :  { %p2834_p7 = pnand %p2833_p6, %p2827_p3 }
  0x10   :  { %2837 = shalt.err (!%p2834_p7)
}
  0x11   :  { %s2877_s11 = smov 128   ;;  %s2878_s12 = smov 8  }
  0x12   :  { %30 = dma.hbm_to_vmem [thread:$0]  %s3599_s2, 4096, %s25_s25, [#allocation5], %s2877_s11, %s2877_s11, %s2878_s12  }
  0x13   :  { %s2879_s15 = smov [#allocation7]   ;;  %s2838_s19 = scalar_lea.hbm %s3600_s3, 256 }
  0x14   :  { %s36_s16 = sshll.u32 %s2879_s15, 4  ;;  %p2839_p8 = scmp.ne.s32.totalorder %s3600_s3, %s2838_s19  ;;  %s37_s16 = int_to_ptr.vmem [resolvable:$true] %s36_s16 }
  0x15   :  { %p2842_p9 = scmp.lt.u32.totalorder %s2838_s19, %s3600_s3 }
  0x17   :  { %p2844_p10 = pnand %p2842_p9, %p2839_p8 }
  0x19   :  { %2847 = shalt.err (!%p2844_p10)
}
  0x1a   :  { %s2848_s24 = scalar_lea.vmem %s37_s16, 256  ;;  %p2853_p12 = scmp.lt.s32.totalorder %s37_s16, %s37_s16 }
  0x1b   :  { %p2849_p11 = scmp.ne.s32.totalorder %s37_s16, %s2848_s24  ;;  %p2854_p13 = scmp.lt.s32.totalorder %s2848_s24, %s2848_s24 }
  0x1d   :  { %p2855_p0 = por %p2854_p13, %p2853_p12 }
  0x1f   :  { %p2856_p1 = pnand %p2855_p0, %p2849_p11 }
  0x21   :  { %2859 = shalt.err (!%p2856_p1)
}
  0x22   :  { %s2880_s2 = smov 64   ;;  %s2881_s25 = smov 4  }
  0x23   :  { %42 = dma.hbm_to_vmem [thread:$0]  %s3600_s3, 256, %s37_s16, [#allocation8], %s2880_s2, %s2880_s2, %s2881_s25  }
  0x24   :  { %2870 = dma.done.wait [#allocation5], 4096  }
  0x25   :  { %2871 = vsyncadd [#allocation5], 4294963200 }
  0x26   :  { %2872 = dma.done.wait [#allocation8], 256  }
  0x27   :  { %2873 = vsyncadd [#allocation8], 4294967040  ;;  %v2694_v0 = vld [vmem:[#allocation7] sm:$0xff]   ;;  %v2695_v1 = vld [vmem:[#allocation7 + $0x8] sm:$0xff]   ;;  %vm195_vm0 = vcmask 261120   ;;  %vm701_vm1 = vcmask 523264  }
  0x28   :  { %2591 = vmatprep.subr.bf16.mxu0 %v2694_v0  ;;  %v2696_v2 = vld [vmem:[%s3597_s0] sm:$0xff]   ;;  %2675 = vmatprep.subr.bf16.mxu1 %v2694_v0  ;;  %v2697_v3 = vld [vmem:[%s3597_s0 + $0x8] sm:$0xff]   ;;  %v2698_v4 = vld [vmem:[%s3597_s0 + $0x10] sm:$0xff]   ;;  %s2860_s21 = scalar_lea.hbm %s3604_s7, 16 }
  0x29   :  { %2592 = vmatpush3.bf16.msra.mxu0 %v2694_v0  ;;  %2677 = vmatpush3.bf16.msra.mxu1 %v2694_v0  ;;  %v2704_v5 = vld [vmem:[%s3597_s0 + $0x40] sm:$0xff]   ;;  %v2705_v6 = vld [vmem:[%s3597_s0 + $0x48] sm:$0xff]   ;;  %v2706_v7 = vld [vmem:[%s3597_s0 + $0x50] sm:$0xff]   ;;  %p2861_p2 = scmp.ne.s32.totalorder %s3604_s7, %s2860_s21  ;;  %p2864_p3 = scmp.lt.u32.totalorder %s2860_s21, %s3604_s7 }
  0x2a   :  { %2593 = vmatprep.subr.bf16.mxu0 %v2695_v1  ;;  %2595 = vmatprep.mubr.msk.bf16.mxu0 %vm195_vm0, %v2696_v2  ;;  %v2699_v8 = vld [vmem:[%s3597_s0 + $0x18] sm:$0xff]   ;;  %v2700_v9 = vld [vmem:[%s3597_s0 + $0x20] sm:$0xff]   ;;  %v2713_v13 = vld [vmem:[%s3602_s5 + $0x8] sm:$0xff]  }
  0x2b   :  { %2676 = vmatprep.subr.bf16.mxu1 %v2695_v1  ;;  %2611 = vmatprep.mubr.msk.bf16.mxu1 %vm195_vm0, %v2704_v5  ;;  %v2707_v10 = vld [vmem:[%s3597_s0 + $0x58] sm:$0xff]   ;;  %v2708_v11 = vld [vmem:[%s3597_s0 + $0x60] sm:$0xff]   ;;  %v2701_v14 = vld [vmem:[%s3597_s0 + $0x28] sm:$0xff]   ;;  %p2866_p4 = pnand %p2864_p3, %p2861_p2 }
  0x2c   :  { %v2712_v12 = vld [vmem:[%s3602_s5] sm:$0xff]   ;;  %v2702_v15 = vld [vmem:[%s3597_s0 + $0x30] sm:$0xff]   ;;  %v2709_v16 = vld [vmem:[%s3597_s0 + $0x68] sm:$0xff]  }
  0x2d   :  { %2594 = vmatpush3.bf16.msra.mxu0 %v2695_v1  ;;  %2678 = vmatpush3.bf16.msra.mxu1 %v2695_v1  ;;  %v2714_v17 = vld [vmem:[%s3602_s5 + $0x10] sm:$0xff]   ;;  %v2715_v19 = vld [vmem:[%s3602_s5 + $0x18] sm:$0xff]   ;;  %v2716_v21 = vld [vmem:[%s3602_s5 + $0x20] sm:$0xff]  }
  0x2e   :  { %2627 = vmatprep.subr.bf16.mxu1 %v2712_v12  ;;  %v2710_v18 = vld [vmem:[%s3597_s0 + $0x70] sm:$0xff]   ;;  %v2703_v20 = vld [vmem:[%s3597_s0 + $0x38] sm:$0xff]   ;;  %v2717_v23 = vld [vmem:[%s3602_s5 + $0x28] sm:$0xff]  }
  0x2f   :  { %v2711_v22 = vld [vmem:[%s3597_s0 + $0x78] sm:$0xff]   ;;  %v2718_v24 = vld [vmem:[%s3602_s5 + $0x30] sm:$0xff]   ;;  %v3042_v26 = vld [vmem:[%s3601_s4] ss:$0 sm:$0xff] }
  0x30   :  { %2596 = vmatmul.mubr.msk.bf16.vlgmr.msra.gmra.mrb[0].mxu0 %vm195_vm0, %v2697_v3  ;;  %2612 = vmatmul.mubr.msk.bf16.vlgmr.msra.gmra.mrb[0].mxu1 %vm195_vm0, %v2705_v6  ;;  %v2719_v25 = vld [vmem:[%s3602_s5 + $0x38] sm:$0xff]  }
  0x31   :  { %2599 = vmatprep.mubr.msk.bf16.mxu0 %vm195_vm0, %v2698_v4  ;;  %2615 = vmatprep.mubr.msk.bf16.mxu1 %vm195_vm0, %v2706_v7 }
  0x32   :  { %2628 = vmatpush3.bf16.msra.mxu1 %v2712_v12 }
  0x33   :  { %2629 = vmatprep.subr.bf16.mxu1 %v2713_v13 }
  0x36   :  { %2630 = vmatpush3.bf16.msra.mxu1 %v2713_v13 }
  0x37   :  { %2631 = vmatprep.subr.bf16.mxu1 %v2714_v17 }
  0x38   :  { %2600 = vmatmul.mubr.msk.bf16.gmra.mrb[4].mxu0 %vm195_vm0, %v2699_v8  ;;  %2616 = vmatmul.mubr.msk.bf16.gmra.mrb[4].mxu1 %vm195_vm0, %v2707_v10 }
  0x39   :  { %2603 = vmatprep.mubr.msk.bf16.mxu0 %vm195_vm0, %v2700_v9  ;;  %2619 = vmatprep.mubr.msk.bf16.mxu1 %vm195_vm0, %v2708_v11 }
  0x3a   :  { %2632 = vmatpush3.bf16.msra.mxu1 %v2714_v17 }
  0x3b   :  { %2633 = vmatprep.subr.bf16.mxu1 %v2715_v19 }
  0x3e   :  { %2634 = vmatpush3.bf16.msra.mxu1 %v2715_v19 }
  0x3f   :  { %2635 = vmatprep.subr.bf16.mxu1 %v2716_v21 }
  0x40   :  { %2604 = vmatmul.mubr.msk.bf16.gmra.mrb[8].mxu0 %vm195_vm0, %v2701_v14  ;;  %2620 = vmatmul.mubr.msk.bf16.gmra.mrb[8].mxu1 %vm195_vm0, %v2709_v16 }
  0x41   :  { %2607 = vmatprep.mubr.msk.bf16.mxu0 %vm195_vm0, %v2702_v15  ;;  %2623 = vmatprep.mubr.msk.bf16.mxu1 %vm195_vm0, %v2710_v18 }
  0x42   :  { %2636 = vmatpush3.bf16.msra.mxu1 %v2716_v21 }
  0x43   :  { %2637 = vmatprep.subr.bf16.mxu1 %v2717_v23 }
  0x46   :  { %2638 = vmatpush3.bf16.msra.mxu1 %v2717_v23 }
  0x47   :  { %2639 = vmatprep.subr.bf16.mxu1 %v2718_v24 }
  0x48   :  { %2608 = vmatmul.mubr.msk.bf16.gmra.mrb[12].mxu0 %vm195_vm0, %v2703_v20  ;;  %2624 = vmatmul.mubr.msk.bf16.gmra.mrb[12].mxu1 %vm195_vm0, %v2711_v22 }
  0x4a   :  { %2640 = vmatpush3.bf16.msra.mxu1 %v2718_v24 }
  0x4b   :  { %2641 = vmatprep.subr.bf16.mxu1 %v2719_v25 }
  0x4e   :  { %2642 = vmatpush3.bf16.msra.mxu1 %v2719_v25 }
 0x103   :  { %v2597_v27 = vpop.f32.mrb[0].mxu0  ;;  %v2613_v34 = vpop.f32.mrb[0].mxu1 }
 0x104   :  { %v287_v28 = vadd.f32 %v2597_v27, %v3042_v26  ;;  %v278_v29 = vpop.f32.mrb[1].mxu0  ;;  %v351_v36 = vadd.f32 %v2613_v34, %v3042_v26  ;;  %v342_v37 = vpop.f32.mrb[1].mxu1 }
 0x105   :  { %v279_v30 = vadd.f32 %v3042_v26, %v278_v29  ;;  %v2598_v31 = vpop.f32.mrb[2].mxu0  ;;  %v343_v40 = vadd.f32 %v3042_v26, %v342_v37  ;;  %v2614_v41 = vpop.f32.mrb[2].mxu1 }
 0x106   :  { %v290_v32 = vadd.f32 %v2598_v31, %v3042_v26  ;;  %v281_v33 = vpop.f32.mrb[3].mxu0  ;;  %v407_v38 = vmax.f32 %v287_v28, 0.0  ;;  %v423_v44 = vmax.f32 %v351_v36, 0.0  ;;  %v354_v45 = vadd.f32 %v2614_v41, %v3042_v26  ;;  %v345_v46 = vpop.f32.mrb[3].mxu1 }
 0x107   :  { %v282_v35 = vadd.f32 %v3042_v26, %v281_v33  ;;  %v405_v42 = vmax.f32 %v279_v30, 0.0  ;;  %v421_v48 = vmax.f32 %v343_v40, 0.0  ;;  %v346_v49 = vadd.f32 %v3042_v26, %v345_v46 }
 0x108   :  { %v408_v39 = vmax.f32 %v290_v32, 0.0  ;;  %v424_v52 = vmax.f32 %v354_v45, 0.0 }
 0x109   :  { %v406_v43 = vmax.f32 %v282_v35, 0.0  ;;  %v422_v55 = vmax.f32 %v346_v49, 0.0 }
 0x10a   :  { %v438_v47 = vpack.c.bf16 %v408_v39, %v407_v38  ;;  %v3054_v58 = vpack.c.bf16 %v424_v52, %v423_v44 }
 0x10b   :  { %v437_v50 = vpack.c.bf16 %v406_v43, %v405_v42  ;;  %v2601_v51 = vpop.f32.mrb[4].mxu0  ;;  %v3057_v61 = vpack.c.bf16 %v422_v55, %v421_v48  ;;  %v2617_v62 = vpop.f32.mrb[4].mxu1 }
 0x10c   :  { %v303_v53 = vadd.f32 %v2601_v51, %v3042_v26  ;;  %v294_v54 = vpop.f32.mrb[5].mxu0  ;;  %v367_v0 = vadd.f32 %v2617_v62, %v3042_v26  ;;  %v358_v1 = vpop.f32.mrb[5].mxu1 }
 0x10d   :  { %v295_v56 = vadd.f32 %v3042_v26, %v294_v54  ;;  %v2602_v57 = vpop.f32.mrb[6].mxu0  ;;  %2643 = vmatprep.mubr.bf16.mxu1 %v437_v50  ;;  %v359_v4 = vadd.f32 %v3042_v26, %v358_v1  ;;  %v2618_v5 = vpop.f32.mrb[6].mxu1 }
 0x10e   :  { %v306_v59 = vadd.f32 %v2602_v57, %v3042_v26  ;;  %v297_v60 = vpop.f32.mrb[7].mxu0  ;;  %2644 = vmatmul.mubr.bf16.vlgmr.msra.gmra.mrb[16].mxu1 %v438_v47  ;;  %v411_v2 = vmax.f32 %v303_v53, 0.0  ;;  %v427_v8 = vmax.f32 %v367_v0, 0.0  ;;  %v370_v9 = vadd.f32 %v2618_v5, %v3042_v26  ;;  %v361_v10 = vpop.f32.mrb[7].mxu1 }
 0x10f   :  { %v298_v63 = vadd.f32 %v3042_v26, %v297_v60  ;;  %v409_v6 = vmax.f32 %v295_v56, 0.0  ;;  %v425_v12 = vmax.f32 %v359_v4, 0.0  ;;  %v362_v13 = vadd.f32 %v3042_v26, %v361_v10 }
 0x110   :  { %v412_v3 = vmax.f32 %v306_v59, 0.0  ;;  %v428_v16 = vmax.f32 %v370_v9, 0.0 }
 0x111   :  { %v410_v7 = vmax.f32 %v298_v63, 0.0  ;;  %v426_v19 = vmax.f32 %v362_v13, 0.0 }
 0x112   :  { %v440_v11 = vpack.c.bf16 %v412_v3, %v411_v2  ;;  %v448_v22 = vpack.c.bf16 %v428_v16, %v427_v8 }
 0x113   :  { %v439_v14 = vpack.c.bf16 %v410_v7, %v409_v6  ;;  %v2605_v15 = vpop.f32.mrb[8].mxu0  ;;  %v447_v25 = vpack.c.bf16 %v426_v19, %v425_v12  ;;  %v2621_v27 = vpop.f32.mrb[8].mxu1 }
 0x114   :  { %v319_v17 = vadd.f32 %v2605_v15, %v3042_v26  ;;  %v310_v18 = vpop.f32.mrb[9].mxu0  ;;  %v383_v29 = vadd.f32 %v2621_v27, %v3042_v26  ;;  %v374_v30 = vpop.f32.mrb[9].mxu1 }
 0x115   :  { %v311_v20 = vadd.f32 %v3042_v26, %v310_v18  ;;  %v2606_v21 = vpop.f32.mrb[10].mxu0  ;;  %2647 = vmatprep.mubr.bf16.mxu1 %v439_v14  ;;  %v375_v33 = vadd.f32 %v3042_v26, %v374_v30  ;;  %v2622_v34 = vpop.f32.mrb[10].mxu1 }
 0x116   :  { %v322_v23 = vadd.f32 %v2606_v21, %v3042_v26  ;;  %v313_v24 = vpop.f32.mrb[11].mxu0  ;;  %2648 = vmatmul.mubr.bf16.gmra.mrb[20].mxu1 %v440_v11  ;;  %v415_v31 = vmax.f32 %v319_v17, 0.0  ;;  %v431_v37 = vmax.f32 %v383_v29, 0.0  ;;  %v386_v38 = vadd.f32 %v2622_v34, %v3042_v26  ;;  %v377_v39 = vpop.f32.mrb[11].mxu1 }
 0x117   :  { %v314_v28 = vadd.f32 %v3042_v26, %v313_v24  ;;  %v413_v35 = vmax.f32 %v311_v20, 0.0  ;;  %v429_v41 = vmax.f32 %v375_v33, 0.0  ;;  %v378_v42 = vadd.f32 %v3042_v26, %v377_v39 }
 0x118   :  { %v416_v32 = vmax.f32 %v322_v23, 0.0  ;;  %v432_v45 = vmax.f32 %v386_v38, 0.0 }
 0x119   :  { %v414_v36 = vmax.f32 %v314_v28, 0.0  ;;  %v430_v48 = vmax.f32 %v378_v42, 0.0 }
 0x11a   :  { %v442_v40 = vpack.c.bf16 %v416_v32, %v415_v31  ;;  %v450_v51 = vpack.c.bf16 %v432_v45, %v431_v37 }
 0x11b   :  { %v441_v43 = vpack.c.bf16 %v414_v36, %v413_v35  ;;  %v2609_v44 = vpop.f32.mrb[12].mxu0  ;;  %v449_v54 = vpack.c.bf16 %v430_v48, %v429_v41  ;;  %v2625_v55 = vpop.f32.mrb[12].mxu1 }
 0x11c   :  { %v335_v46 = vadd.f32 %v2609_v44, %v3042_v26  ;;  %v326_v47 = vpop.f32.mrb[13].mxu0  ;;  %v399_v57 = vadd.f32 %v2625_v55, %v3042_v26  ;;  %v390_v59 = vpop.f32.mrb[13].mxu1 }
 0x11d   :  { %v327_v49 = vadd.f32 %v3042_v26, %v326_v47  ;;  %v2610_v50 = vpop.f32.mrb[14].mxu0  ;;  %2651 = vmatprep.mubr.bf16.mxu1 %v441_v43  ;;  %v391_v63 = vadd.f32 %v3042_v26, %v390_v59  ;;  %v2626_v0 = vpop.f32.mrb[14].mxu1 }
 0x11e   :  { %v338_v52 = vadd.f32 %v2610_v50, %v3042_v26  ;;  %v329_v53 = vpop.f32.mrb[15].mxu0  ;;  %2652 = vmatmul.mubr.bf16.gmra.mrb[24].mxu1 %v442_v40  ;;  %v419_v60 = vmax.f32 %v335_v46, 0.0  ;;  %v435_v3 = vmax.f32 %v399_v57, 0.0  ;;  %v402_v4 = vadd.f32 %v2626_v0, %v3042_v26  ;;  %v393_v5 = vpop.f32.mrb[15].mxu1 }
 0x11f   :  { %v330_v56 = vadd.f32 %v3042_v26, %v329_v53  ;;  %v417_v1 = vmax.f32 %v327_v49, 0.0  ;;  %v433_v7 = vmax.f32 %v391_v63, 0.0  ;;  %v394_v8 = vadd.f32 %v3042_v26, %v393_v5  ;;  %v3085_v26 = vld [vmem:[%s3603_s6] ss:$0 sm:$0xff]  ;;  %s2882_s6 = smov 96  }
 0x120   :  { %v420_v62 = vmax.f32 %v338_v52, 0.0  ;;  %v436_v10 = vmax.f32 %v402_v4, 0.0 }
 0x121   :  { %v418_v2 = vmax.f32 %v330_v56, 0.0  ;;  %v434_v11 = vmax.f32 %v394_v8, 0.0 }
 0x122   :  { %v444_v6 = vpack.c.bf16 %v420_v62, %v419_v60  ;;  %v452_v12 = vpack.c.bf16 %v436_v10, %v435_v3 }
 0x123   :  { %v443_v9 = vpack.c.bf16 %v418_v2, %v417_v1  ;;  %v451_v13 = vpack.c.bf16 %v434_v11, %v433_v7 }
 0x125   :  { %2655 = vmatprep.mubr.bf16.mxu1 %v443_v9 }
 0x126   :  { %2656 = vmatmul.mubr.bf16.gmra.mrb[28].mxu1 %v444_v6 }
 0x127   :  { %2659 = vmatprep.mubr.bf16.mxu1 %v3057_v61 }
 0x12e   :  { %2660 = vmatmul.mubr.bf16.gmra.mrb[32].mxu1 %v3054_v58 }
 0x12f   :  { %2663 = vmatprep.mubr.bf16.mxu1 %v447_v25 }
 0x136   :  { %2664 = vmatmul.mubr.bf16.gmra.mrb[36].mxu1 %v448_v22 }
 0x137   :  { %2667 = vmatprep.mubr.bf16.mxu1 %v449_v54 }
 0x13e   :  { %2668 = vmatmul.mubr.bf16.gmra.mrb[40].mxu1 %v450_v51 }
 0x13f   :  { %2671 = vmatprep.mubr.bf16.mxu1 %v451_v13 }
 0x146   :  { %2672 = vmatmul.mubr.bf16.gmra.mrb[44].mxu1 %v452_v12 }
 0x1e1   :  { %v2645_v14 = vpop.f32.mrb[16].mxu1 }
 0x1e2   :  { %v558_v15 = vpop.f32.mrb[17].mxu1  ;;  %v567_v17 = vadd.f32 %v2645_v14, %v3085_v26 }
 0x1e3   :  { %v2646_v16 = vpop.f32.mrb[18].mxu1  ;;  %v559_v58 = vadd.f32 %v3085_v26, %v558_v15 }
 0x1e4   :  { %v570_v61 = vadd.f32 %v2646_v16, %v3085_v26  ;;  %v561_v18 = vpop.f32.mrb[19].mxu1 }
 0x1e5   :  { %v562_v19 = vadd.f32 %v3085_v26, %v561_v18 }
 0x1e6   :  { %v686_v20 = vpack.c.bf16 %v570_v61, %v567_v17 }
 0x1e7   :  { %v685_v21 = vpack.c.bf16 %v562_v19, %v559_v58 }
 0x1e8   :  { %703 = vst.msk [vmem:[#allocation2 + $0x8] sm:$0xff] %vm701_vm1, %v686_v20 }
 0x1e9   :  { %702 = vst.msk [vmem:[#allocation2] sm:$0xff] %vm701_vm1, %v685_v21  ;;  %v2649_v22 = vpop.f32.mrb[20].mxu1 }
 0x1ea   :  { %v574_v23 = vpop.f32.mrb[21].mxu1  ;;  %v583_v25 = vadd.f32 %v2649_v22, %v3085_v26 }
 0x1eb   :  { %v2650_v24 = vpop.f32.mrb[22].mxu1  ;;  %v575_v29 = vadd.f32 %v3085_v26, %v574_v23 }
 0x1ec   :  { %v586_v27 = vadd.f32 %v2650_v24, %v3085_v26  ;;  %v577_v28 = vpop.f32.mrb[23].mxu1 }
 0x1ed   :  { %v578_v30 = vadd.f32 %v3085_v26, %v577_v28 }
 0x1ee   :  { %v688_v31 = vpack.c.bf16 %v586_v27, %v583_v25 }
 0x1ef   :  { %v687_v32 = vpack.c.bf16 %v578_v30, %v575_v29  ;;  %v3136_v17 = vld [vmem:[#allocation2 + $0x8] sm:$0xff] }
 0x1f0   :  { %705 = vst.msk [vmem:[#allocation2 + $0x18] sm:$0xff] %vm701_vm1, %v688_v31  ;;  %v3132_v14 = vld [vmem:[#allocation2] sm:$0xff] }
 0x1f1   :  { %704 = vst.msk [vmem:[#allocation2 + $0x10] sm:$0xff] %vm701_vm1, %v687_v32  ;;  %v2653_v33 = vpop.f32.mrb[24].mxu1 }
 0x1f2   :  { %v590_v34 = vpop.f32.mrb[25].mxu1  ;;  %v599_v36 = vadd.f32 %v2653_v33, %v3085_v26 }
 0x1f3   :  { %v2654_v35 = vpop.f32.mrb[26].mxu1  ;;  %v591_v39 = vadd.f32 %v3085_v26, %v590_v34 }
 0x1f4   :  { %v602_v37 = vadd.f32 %v2654_v35, %v3085_v26  ;;  %v593_v38 = vpop.f32.mrb[27].mxu1 }
 0x1f5   :  { %v594_v40 = vadd.f32 %v3085_v26, %v593_v38 }
 0x1f6   :  { %v690_v41 = vpack.c.bf16 %v602_v37, %v599_v36 }
 0x1f7   :  { %v689_v42 = vpack.c.bf16 %v594_v40, %v591_v39  ;;  %v737_v30 = vld [vmem:[#allocation2 + $0x18] sm:$0xff] }
 0x1f8   :  { %707 = vst.msk [vmem:[#allocation2 + $0x28] sm:$0xff] %vm701_vm1, %v690_v41  ;;  %v736_v23 = vld [vmem:[#allocation2 + $0x10] sm:$0xff] }
 0x1f9   :  { %706 = vst.msk [vmem:[#allocation2 + $0x20] sm:$0xff] %vm701_vm1, %v689_v42  ;;  %v2657_v43 = vpop.f32.mrb[28].mxu1 }
 0x1fa   :  { %v606_v44 = vpop.f32.mrb[29].mxu1  ;;  %v615_v46 = vadd.f32 %v2657_v43, %v3085_v26 }
 0x1fb   :  { %v2658_v45 = vpop.f32.mrb[30].mxu1  ;;  %v607_v49 = vadd.f32 %v3085_v26, %v606_v44 }
 0x1fc   :  { %v618_v47 = vadd.f32 %v2658_v45, %v3085_v26  ;;  %v609_v48 = vpop.f32.mrb[31].mxu1 }
 0x1fd   :  { %v610_v50 = vadd.f32 %v3085_v26, %v609_v48 }
 0x1fe   :  { %v692_v51 = vpack.c.bf16 %v618_v47, %v615_v46 }
 0x1ff   :  { %v691_v52 = vpack.c.bf16 %v610_v50, %v607_v49  ;;  %v3161_v41 = vld [vmem:[#allocation2 + $0x28] sm:$0xff] }
 0x200   :  { %709 = vst.msk [vmem:[#allocation2 + $0x38] sm:$0xff] %vm701_vm1, %v692_v51  ;;  %v738_v38 = vld [vmem:[#allocation2 + $0x20] sm:$0xff] }
 0x201   :  { %708 = vst.msk [vmem:[#allocation2 + $0x30] sm:$0xff] %vm701_vm1, %v691_v52  ;;  %v2661_v53 = vpop.f32.mrb[32].mxu1 }
 0x202   :  { %v622_v54 = vpop.f32.mrb[33].mxu1  ;;  %v631_v56 = vadd.f32 %v2661_v53, %v3085_v26 }
 0x203   :  { %v2662_v55 = vpop.f32.mrb[34].mxu1  ;;  %v623_v60 = vadd.f32 %v3085_v26, %v622_v54 }
 0x204   :  { %v634_v57 = vadd.f32 %v2662_v55, %v3085_v26  ;;  %v625_v59 = vpop.f32.mrb[35].mxu1 }
 0x205   :  { %v626_v62 = vadd.f32 %v3085_v26, %v625_v59 }
 0x206   :  { %v694_v63 = vpack.c.bf16 %v634_v57, %v631_v56  ;;  %v2767_v56 = vld [vmem:[%s3598_s1 + $0x4] ss:$8 sps:$4 sm:$0xff]   ;;  %v2765_v57 = vld [vmem:[%s3598_s1] ss:$8 sps:$4 sm:$0xff]  }
 0x207   :  { %v693_v0 = vpack.c.bf16 %v626_v62, %v623_v60  ;;  %v3179_v45 = vld [vmem:[#allocation2 + $0x38] sm:$0xff]  ;;  %974 = vmatprep.mubr.bf16.mxu0 %v2767_v56 }
 0x208   :  { %711 = vst.msk [vmem:[#allocation2 + $0x48] sm:$0xff] %vm701_vm1, %v694_v63  ;;  %v3167_v42 = vld [vmem:[#allocation2 + $0x30] sm:$0xff] }
 0x209   :  { %710 = vst.msk [vmem:[#allocation2 + $0x40] sm:$0xff] %vm701_vm1, %v693_v0  ;;  %v2665_v1 = vpop.f32.mrb[36].mxu1  ;;  %v2771_v63 = vld [vmem:[%s3598_s1 + $0x14] ss:$8 sps:$4 sm:$0xff]  }
 0x20a   :  { %v638_v2 = vpop.f32.mrb[37].mxu1  ;;  %v647_v4 = vadd.f32 %v2665_v1, %v3085_v26  ;;  %v2773_v1 = vld [vmem:[%s3598_s1 + $0x10] ss:$8 sps:$4 sm:$0xff]   ;;  %v2759_v56 = vld [vmem:[#allocation4 + $0xd4] ss:$8 sps:$4 sm:$0xff]  }
 0x20b   :  { %v2666_v3 = vpop.f32.mrb[38].mxu1  ;;  %v639_v7 = vadd.f32 %v3085_v26, %v638_v2 }
 0x20c   :  { %v650_v5 = vadd.f32 %v2666_v3, %v3085_v26  ;;  %v641_v6 = vpop.f32.mrb[39].mxu1  ;;  %v2774_v3 = vld [vmem:[%s3598_s1 + $0x24] ss:$8 sps:$4 sm:$0xff]  }
 0x20d   :  { %v642_v8 = vadd.f32 %v3085_v26, %v641_v6  ;;  %v2776_v6 = vld [vmem:[%s3598_s1 + $0x20] ss:$8 sps:$4 sm:$0xff]  }
 0x20e   :  { %v696_v9 = vpack.c.bf16 %v650_v5, %v647_v4  ;;  %v2720_v5 = vld [vmem:[#allocation4] ss:$8 sps:$4 sm:$0xff]  }
 0x20f   :  { %v695_v10 = vpack.c.bf16 %v642_v8, %v639_v7  ;;  %v3121_v11 = vld [vmem:[#allocation2 + $0x48] sm:$0xff]  ;;  %v2723_v7 = vld [vmem:[#allocation4 + $0x14] ss:$8 sps:$4 sm:$0xff]  }
 0x210   :  { %713 = vst.msk [vmem:[#allocation2 + $0x58] sm:$0xff] %vm701_vm1, %v696_v9  ;;  %1329 = vrot.lane.b32.xlu1 %v3121_v11, %s2882_s6  ;;  %v3126_v12 = vld [vmem:[#allocation2 + $0x40] sm:$0xff]  ;;  %v2777_v8 = vld [vmem:[%s3598_s1 + $0x34] ss:$8 sps:$4 sm:$0xff]   ;;  %v2725_v9 = vld [vmem:[#allocation4 + $0x10] ss:$8 sps:$4 sm:$0xff]  }
 0x211   :  { %712 = vst.msk [vmem:[#allocation2 + $0x50] sm:$0xff] %vm701_vm1, %v695_v10  ;;  %v2669_v13 = vpop.f32.mrb[40].mxu1  ;;  %1327 = vrot.lane.b32.xlu0 %v3126_v12, %s2882_s6  ;;  %2303 = vmatprep.subr.bf16.mxu0 %v3126_v12  ;;  %v2779_v10 = vld [vmem:[%s3598_s1 + $0x30] ss:$8 sps:$4 sm:$0xff]  }
 0x212   :  { %v654_v15 = vpop.f32.mrb[41].mxu1  ;;  %2304 = vmatpush3.bf16.msra.mxu0 %v3132_v14  ;;  %v663_v61 = vadd.f32 %v2669_v13, %v3085_v26  ;;  %v2728_v13 = vld [vmem:[#allocation4 + $0x20] ss:$8 sps:$4 sm:$0xff]  }
 0x213   :  { %v2670_v16 = vpop.f32.mrb[42].mxu1  ;;  %2305 = vmatprep.subr.bf16.mxu0 %v3121_v11  ;;  %v655_v19 = vadd.f32 %v3085_v26, %v654_v15  ;;  %v2729_v15 = vld [vmem:[#allocation4 + $0x34] ss:$8 sps:$4 sm:$0xff]  }
 0x214   :  { %v666_v18 = vadd.f32 %v2670_v16, %v3085_v26  ;;  %1313 = vrot.lane.b32.xlu1 %v3136_v17, %s2882_s6  ;;  %v657_v58 = vpop.f32.mrb[43].mxu1  ;;  %v2783_v16 = vld [vmem:[%s3598_s1 + $0x54] ss:$8 sps:$4 sm:$0xff]  }
 0x215   :  { %v658_v20 = vadd.f32 %v3085_v26, %v657_v58  ;;  %1311 = vrot.lane.b32.xlu0 %v3132_v14, %s2882_s6  ;;  %v2786_v58 = vld [vmem:[%s3598_s1 + $0x64] ss:$8 sps:$4 sm:$0xff]  }
 0x216   :  { %v698_v21 = vpack.c.bf16 %v666_v18, %v663_v61  ;;  %2306 = vmatpush3.bf16.msra.mxu0 %v3136_v17  ;;  %v2785_v61 = vld [vmem:[%s3598_s1 + $0x50] ss:$8 sps:$4 sm:$0xff]   ;;  %v2732_v18 = vld [vmem:[#allocation4 + $0x44] ss:$8 sps:$4 sm:$0xff]  }
 0x217   :  { %v697_v22 = vpack.c.bf16 %v658_v20, %v655_v19  ;;  %v745_v28 = vld [vmem:[#allocation2 + $0x58] sm:$0xff]  ;;  %v2734_v19 = vld [vmem:[#allocation4 + $0x40] ss:$8 sps:$4 sm:$0xff]  }
 0x218   :  { %715 = vst.msk [vmem:[#allocation2 + $0x68] sm:$0xff] %vm701_vm1, %v698_v21  ;;  %1315 = vrot.lane.b32.xlu1 %v736_v23, %s2882_s6  ;;  %v744_v24 = vld [vmem:[#allocation2 + $0x50] sm:$0xff]  ;;  %v2788_v20 = vld [vmem:[%s3598_s1 + $0x60] ss:$8 sps:$4 sm:$0xff]  }
 0x219   :  { %714 = vst.msk [vmem:[#allocation2 + $0x60] sm:$0xff] %vm701_vm1, %v697_v22  ;;  %v2673_v25 = vpop.f32.mrb[44].mxu1  ;;  %1331 = vrot.lane.b32.xlu0 %v744_v24, %s2882_s6  ;;  %2307 = vmatprep.subr.bf16.mxu0 %v744_v24  ;;  %v2735_v21 = vld [vmem:[#allocation4 + $0x54] ss:$8 sps:$4 sm:$0xff]  }
 0x21a   :  { %v670_v27 = vpop.f32.mrb[45].mxu1  ;;  %2308 = vmatpush3.bf16.msra.mxu0 %v736_v23  ;;  %v679_v31 = vadd.f32 %v2673_v25, %v3085_v26  ;;  %v2789_v22 = vld [vmem:[%s3598_s1 + $0x74] ss:$8 sps:$4 sm:$0xff]   ;;  %v2738_v25 = vld [vmem:[#allocation4 + $0x64] ss:$8 sps:$4 sm:$0xff]  }
 0x21b   :  { %v2674_v29 = vpop.f32.mrb[46].mxu1  ;;  %2309 = vmatprep.subr.bf16.mxu0 %v745_v28  ;;  %v671_v34 = vadd.f32 %v3085_v26, %v670_v27  ;;  %v2792_v27 = vld [vmem:[%s3598_s1 + $0x84] ss:$8 sps:$4 sm:$0xff]  }
 0x21c   :  { %v682_v32 = vadd.f32 %v2674_v29, %v3085_v26  ;;  %v673_v33 = vpop.f32.mrb[47].mxu1  ;;  %1317 = vrot.lane.b32.xlu1 %v737_v30, %s2882_s6  ;;  %v2794_v29 = vld [vmem:[%s3598_s1 + $0x80] ss:$8 sps:$4 sm:$0xff]  }
 0x21d   :  { %v674_v35 = vadd.f32 %v3085_v26, %v673_v33  ;;  %1333 = vrot.lane.b32.xlu0 %v745_v28, %s2882_s6  ;;  %v2722_v26 = vld [vmem:[#allocation4 + $0x4] ss:$8 sps:$4 sm:$0xff]   ;;  %v2797_v33 = vld [vmem:[%s3598_s1 + $0x90] ss:$8 sps:$4 sm:$0xff]  }
 0x21e   :  { %v700_v36 = vpack.c.bf16 %v682_v32, %v679_v31  ;;  %2310 = vmatpush3.bf16.msra.mxu0 %v737_v30  ;;  %1391 = vmatprep.mubr.bf16.mxu1 %v2722_v26  ;;  %v2795_v31 = vld [vmem:[%s3598_s1 + $0x94] ss:$8 sps:$4 sm:$0xff]   ;;  %v2743_v32 = vld [vmem:[#allocation4 + $0x70] ss:$8 sps:$4 sm:$0xff]  }
 0x21f   :  { %v699_v37 = vpack.c.bf16 %v674_v35, %v671_v34  ;;  %v747_v40 = vld [vmem:[#allocation2 + $0x68] sm:$0xff]  ;;  %v2803_v26 = vld [vmem:[%s3598_s1 + $0xb0] ss:$8 sps:$4 sm:$0xff]  }
 0x220   :  { %717 = vst.msk [vmem:[#allocation2 + $0x78] sm:$0xff] %vm701_vm1, %v700_v36  ;;  %1319 = vrot.lane.b32.xlu1 %v738_v38, %s2882_s6  ;;  %v746_v39 = vld [vmem:[#allocation2 + $0x60] sm:$0xff] }
 0x221   :  { %716 = vst.msk [vmem:[#allocation2 + $0x70] sm:$0xff] %vm701_vm1, %v699_v37  ;;  %1335 = vrot.lane.b32.xlu0 %v746_v39, %s2882_s6  ;;  %2311 = vmatprep.subr.bf16.mxu0 %v746_v39  ;;  %v2744_v34 = vld [vmem:[#allocation4 + $0x84] ss:$8 sps:$4 sm:$0xff]   ;;  %v2746_v36 = vld [vmem:[#allocation4 + $0x80] ss:$8 sps:$4 sm:$0xff]  }
 0x222   :  { %2312 = vmatpush3.bf16.msra.mxu0 %v738_v38  ;;  %v2798_v35 = vld [vmem:[%s3598_s1 + $0xa4] ss:$8 sps:$4 sm:$0xff]   ;;  %v2800_v37 = vld [vmem:[%s3598_s1 + $0xa0] ss:$8 sps:$4 sm:$0xff]  }
 0x223   :  { %2313 = vmatprep.subr.bf16.mxu0 %v747_v40 }
 0x224   :  { %1321 = vrot.lane.b32.xlu1 %v3161_v41, %s2882_s6 }
 0x225   :  { %1337 = vrot.lane.b32.xlu0 %v747_v40, %s2882_s6 }
 0x226   :  { %2314 = vmatpush3.bf16.msra.mxu0 %v3161_v41 }
 0x227   :  { %v3177_v44 = vld [vmem:[#allocation2 + $0x78] sm:$0xff] }
 0x228   :  { %1323 = vrot.lane.b32.xlu1 %v3167_v42, %s2882_s6  ;;  %v3171_v43 = vld [vmem:[#allocation2 + $0x70] sm:$0xff] }
 0x229   :  { %1339 = vrot.lane.b32.xlu0 %v3171_v43, %s2882_s6  ;;  %2315 = vmatprep.subr.bf16.mxu0 %v3171_v43 }
 0x22a   :  { %2316 = vmatpush3.bf16.msra.mxu0 %v3167_v42 }
 0x22b   :  { %2317 = vmatprep.subr.bf16.mxu0 %v3177_v44 }
 0x22c   :  { %1325 = vrot.lane.b32.xlu1 %v3179_v45, %s2882_s6 }
 0x22d   :  { %1341 = vrot.lane.b32.xlu0 %v3177_v44, %s2882_s6 }
 0x22e   :  { %2318 = vmatpush3.bf16.msra.mxu0 %v3179_v45 }
 0x231   :  { %1653 = vrot.lane.b32.xlu0 %v3126_v12, %s2880_s2  ;;  %975 = vmatmul.mubr.bf16.vlgmr.msra.gmra.mrb[16].mxu0 %v2765_v57  ;;  %v2780_v12 = vld [vmem:[%s3598_s1 + $0x44] ss:$8 sps:$4 sm:$0xff]  }
 0x232   :  { %982 = vmatprep.mubr.bf16.mxu0 %v2771_v63  ;;  %v2810_v57 = vld [vmem:[%s3598_s1 + $0xe4] ss:$8 sps:$4 sm:$0xff]   ;;  %v2813_v63 = vld [vmem:[%s3598_s1 + $0xf4] ss:$8 sps:$4 sm:$0xff]  }
 0x235   :  { %1637 = vrot.lane.b32.xlu0 %v3132_v14, %s2880_s2  ;;  %v2782_v14 = vld [vmem:[%s3598_s1 + $0x40] ss:$8 sps:$4 sm:$0xff]  }
 0x239   :  { %1655 = vrot.lane.b32.xlu0 %v3121_v11, %s2880_s2  ;;  %983 = vmatmul.mubr.bf16.gmra.mrb[20].mxu0 %v2773_v1  ;;  %v2726_v11 = vld [vmem:[#allocation4 + $0x24] ss:$8 sps:$4 sm:$0xff]   ;;  %v2764_v1 = vld [vmem:[#allocation4 + $0xe0] ss:$8 sps:$4 sm:$0xff]  }
 0x23a   :  { %990 = vmatprep.mubr.bf16.mxu0 %v2774_v3  ;;  %v2770_v3 = vld [vmem:[#allocation4 + $0xf0] ss:$8 sps:$4 sm:$0xff]  }
 0x23d   :  { %1639 = vrot.lane.b32.xlu0 %v3136_v17, %s2880_s2  ;;  %v2731_v17 = vld [vmem:[#allocation4 + $0x30] ss:$8 sps:$4 sm:$0xff]  }
 0x241   :  { %1657 = vrot.lane.b32.xlu0 %v744_v24, %s2880_s2  ;;  %991 = vmatmul.mubr.bf16.gmra.mrb[24].mxu0 %v2776_v6  ;;  %v2791_v24 = vld [vmem:[%s3598_s1 + $0x70] ss:$8 sps:$4 sm:$0xff]  }
 0x242   :  { %998 = vmatprep.mubr.bf16.mxu0 %v2777_v8 }
 0x245   :  { %1641 = vrot.lane.b32.xlu0 %v736_v23, %s2880_s2  ;;  %v2737_v23 = vld [vmem:[#allocation4 + $0x50] ss:$8 sps:$4 sm:$0xff]  }
 0x249   :  { %1659 = vrot.lane.b32.xlu0 %v745_v28, %s2880_s2  ;;  %999 = vmatmul.mubr.bf16.gmra.mrb[28].mxu0 %v2779_v10  ;;  %v2740_v28 = vld [vmem:[#allocation4 + $0x60] ss:$8 sps:$4 sm:$0xff]  }
 0x24a   :  { %1006 = vmatprep.mubr.bf16.mxu0 %v2780_v12 }
 0x24d   :  { %1643 = vrot.lane.b32.xlu0 %v737_v30, %s2880_s2  ;;  %v2741_v30 = vld [vmem:[#allocation4 + $0x74] ss:$8 sps:$4 sm:$0xff]  }
 0x251   :  { %1661 = vrot.lane.b32.xlu0 %v746_v39, %s2880_s2  ;;  %1007 = vmatmul.mubr.bf16.gmra.mrb[32].mxu0 %v2782_v14  ;;  %v2801_v39 = vld [vmem:[%s3598_s1 + $0xb4] ss:$8 sps:$4 sm:$0xff]  }
 0x252   :  { %1014 = vmatprep.mubr.bf16.mxu0 %v2783_v16 }
 0x255   :  { %1645 = vrot.lane.b32.xlu0 %v738_v38, %s2880_s2  ;;  %v2747_v38 = vld [vmem:[#allocation4 + $0x94] ss:$8 sps:$4 sm:$0xff]  }
 0x259   :  { %1663 = vrot.lane.b32.xlu0 %v747_v40, %s2880_s2  ;;  %1015 = vmatmul.mubr.bf16.gmra.mrb[36].mxu0 %v2785_v61  ;;  %v2749_v40 = vld [vmem:[#allocation4 + $0x90] ss:$8 sps:$4 sm:$0xff]  }
 0x25a   :  { %1022 = vmatprep.mubr.bf16.mxu0 %v2786_v58 }
 0x261   :  { %1023 = vmatmul.mubr.bf16.gmra.mrb[40].mxu0 %v2788_v20 }
 0x262   :  { %1030 = vmatprep.mubr.bf16.mxu0 %v2789_v22 }
 0x269   :  { %1031 = vmatmul.mubr.bf16.gmra.mrb[44].mxu0 %v2791_v24 }
 0x26a   :  { %1038 = vmatprep.mubr.bf16.mxu0 %v2792_v27 }
 0x271   :  { %1039 = vmatmul.mubr.bf16.gmra.mrb[48].mxu0 %v2794_v29 }
 0x272   :  { %1046 = vmatprep.mubr.bf16.mxu0 %v2795_v31 }
 0x279   :  { %1047 = vmatmul.mubr.bf16.gmra.mrb[52].mxu0 %v2797_v33 }
 0x27a   :  { %1054 = vmatprep.mubr.bf16.mxu0 %v2798_v35 }
 0x281   :  { %1055 = vmatmul.mubr.bf16.gmra.mrb[56].mxu0 %v2800_v37 }
 0x282   :  { %v1330_v46 = vpop.permute.xlu1 %1329  ;;  %1062 = vmatprep.mubr.bf16.mxu0 %v2801_v39 }
 0x283   :  { %v1328_v47 = vpop.permute.xlu0 %1327 }
 0x284   :  { %2415 = vmatprep.subr.bf16.mxu1 %v1328_v47  ;;  %v2804_v47 = vld [vmem:[%s3598_s1 + $0xc4] ss:$8 sps:$4 sm:$0xff]  }
 0x286   :  { %v1314_v48 = vpop.permute.xlu1 %1313 }
 0x287   :  { %v1312_v49 = vpop.permute.xlu0 %1311 }
 0x288   :  { %2416 = vmatpush3.bf16.msra.mxu1 %v1312_v49  ;;  %v2806_v49 = vld [vmem:[%s3598_s1 + $0xc0] ss:$8 sps:$4 sm:$0xff]  }
 0x289   :  { %2417 = vmatprep.subr.bf16.mxu1 %v1330_v46  ;;  %v2750_v46 = vld [vmem:[#allocation4 + $0xa4] ss:$8 sps:$4 sm:$0xff]   ;;  %1063 = vmatmul.mubr.bf16.gmra.mrb[60].mxu0 %v2803_v26 }
 0x28a   :  { %v1316_v50 = vpop.permute.xlu1 %1315  ;;  %1070 = vmatprep.mubr.bf16.mxu0 %v2804_v47 }
 0x28b   :  { %v1332_v51 = vpop.permute.xlu0 %1331 }
 0x28c   :  { %2418 = vmatpush3.bf16.msra.mxu1 %v1314_v48  ;;  %v2752_v48 = vld [vmem:[#allocation4 + $0xa0] ss:$8 sps:$4 sm:$0xff]  }
 0x28d   :  { %2419 = vmatprep.subr.bf16.mxu1 %v1332_v51  ;;  %v2755_v51 = vld [vmem:[#allocation4 + $0xb0] ss:$8 sps:$4 sm:$0xff]  }
 0x28e   :  { %v1318_v52 = vpop.permute.xlu1 %1317 }
 0x28f   :  { %v1334_v53 = vpop.permute.xlu0 %1333 }
 0x290   :  { %2420 = vmatpush3.bf16.msra.mxu1 %v1316_v50  ;;  %v2753_v50 = vld [vmem:[#allocation4 + $0xb4] ss:$8 sps:$4 sm:$0xff]  }
 0x291   :  { %2421 = vmatprep.subr.bf16.mxu1 %v1334_v53  ;;  %1071 = vmatmul.mubr.bf16.gmra.mrb[64].mxu0 %v2806_v49  ;;  %v2807_v53 = vld [vmem:[%s3598_s1 + $0xd4] ss:$8 sps:$4 sm:$0xff]  }
 0x292   :  { %v1320_v54 = vpop.permute.xlu1 %1319  ;;  %1078 = vmatprep.mubr.bf16.mxu0 %v2807_v53 }
 0x293   :  { %v1336_v55 = vpop.permute.xlu0 %1335 }
 0x294   :  { %2422 = vmatpush3.bf16.msra.mxu1 %v1318_v52  ;;  %v2756_v52 = vld [vmem:[#allocation4 + $0xc4] ss:$8 sps:$4 sm:$0xff]  }
 0x295   :  { %2423 = vmatprep.subr.bf16.mxu1 %v1336_v55  ;;  %v2758_v55 = vld [vmem:[#allocation4 + $0xc0] ss:$8 sps:$4 sm:$0xff]  }
 0x296   :  { %v1322_v59 = vpop.permute.xlu1 %1321 }
 0x297   :  { %v1338_v60 = vpop.permute.xlu0 %1337 }
 0x298   :  { %2424 = vmatpush3.bf16.msra.mxu1 %v1320_v54  ;;  %v2809_v54 = vld [vmem:[%s3598_s1 + $0xd0] ss:$8 sps:$4 sm:$0xff]  }
 0x299   :  { %2425 = vmatprep.subr.bf16.mxu1 %v1338_v60  ;;  %1079 = vmatmul.mubr.bf16.gmra.mrb[68].mxu0 %v2809_v54  ;;  %v2761_v60 = vld [vmem:[#allocation4 + $0xd0] ss:$8 sps:$4 sm:$0xff]  }
 0x29a   :  { %v1324_v0 = vpop.permute.xlu1 %1323  ;;  %1086 = vmatprep.mubr.bf16.mxu0 %v2810_v57 }
 0x29b   :  { %v1340_v62 = vpop.permute.xlu0 %1339 }
 0x29c   :  { %2426 = vmatpush3.bf16.msra.mxu1 %v1322_v59  ;;  %v2812_v59 = vld [vmem:[%s3598_s1 + $0xe0] ss:$8 sps:$4 sm:$0xff]  }
 0x29d   :  { %2427 = vmatprep.subr.bf16.mxu1 %v1340_v62  ;;  %v2762_v62 = vld [vmem:[#allocation4 + $0xe4] ss:$8 sps:$4 sm:$0xff]  }
 0x29e   :  { %v1326_v4 = vpop.permute.xlu1 %1325 }
 0x29f   :  { %v1342_v2 = vpop.permute.xlu0 %1341 }
 0x2a0   :  { %2428 = vmatpush3.bf16.msra.mxu1 %v1324_v0  ;;  %v2815_v0 = vld [vmem:[%s3598_s1 + $0xf0] ss:$8 sps:$4 sm:$0xff]   ;;  %s2883_s1 = smov 32  }
 0x2a1   :  { %2429 = vmatprep.subr.bf16.mxu1 %v1342_v2  ;;  %1087 = vmatmul.mubr.bf16.gmra.mrb[72].mxu0 %v2812_v59  ;;  %v2768_v2 = vld [vmem:[#allocation4 + $0xf4] ss:$8 sps:$4 sm:$0xff]  }
 0x2a2   :  { %1094 = vmatprep.mubr.bf16.mxu0 %v2813_v63 }
 0x2a4   :  { %2430 = vmatpush3.bf16.msra.mxu1 %v1326_v4 }
 0x2a7   :  { %1392 = vmatmul.mubr.bf16.vlgmr.msra.gmra.mrb[48].mxu1 %v2720_v5 }
 0x2a8   :  { %1399 = vmatprep.mubr.bf16.mxu1 %v2723_v7 }
 0x2a9   :  { %1095 = vmatmul.mubr.bf16.gmra.mrb[76].mxu0 %v2815_v0 }
 0x2af   :  { %1400 = vmatmul.mubr.bf16.gmra.mrb[52].mxu1 %v2725_v9 }
 0x2b0   :  { %1407 = vmatprep.mubr.bf16.mxu1 %v2726_v11 }
 0x2b7   :  { %1408 = vmatmul.mubr.bf16.gmra.mrb[56].mxu1 %v2728_v13 }
 0x2b8   :  { %1415 = vmatprep.mubr.bf16.mxu1 %v2729_v15 }
 0x2bf   :  { %1416 = vmatmul.mubr.bf16.gmra.mrb[60].mxu1 %v2731_v17 }
 0x2c0   :  { %1423 = vmatprep.mubr.bf16.mxu1 %v2732_v18 }
 0x2c7   :  { %1424 = vmatmul.mubr.bf16.gmra.mrb[64].mxu1 %v2734_v19 }
 0x2c8   :  { %1431 = vmatprep.mubr.bf16.mxu1 %v2735_v21 }
 0x2cf   :  { %1432 = vmatmul.mubr.bf16.gmra.mrb[68].mxu1 %v2737_v23 }
 0x2d0   :  { %1439 = vmatprep.mubr.bf16.mxu1 %v2738_v25 }
 0x2d7   :  { %1440 = vmatmul.mubr.bf16.gmra.mrb[72].mxu1 %v2740_v28 }
 0x2d8   :  { %1447 = vmatprep.mubr.bf16.mxu1 %v2741_v30 }
 0x2df   :  { %1448 = vmatmul.mubr.bf16.gmra.mrb[76].mxu1 %v2743_v32 }
 0x2e0   :  { %1455 = vmatprep.mubr.bf16.mxu1 %v2744_v34 }
 0x2e7   :  { %1456 = vmatmul.mubr.bf16.gmra.mrb[80].mxu1 %v2746_v36 }
 0x2e8   :  { %1463 = vmatprep.mubr.bf16.mxu1 %v2747_v38 }
 0x2ef   :  { %1464 = vmatmul.mubr.bf16.gmra.mrb[84].mxu1 %v2749_v40 }
 0x2f0   :  { %1471 = vmatprep.mubr.bf16.mxu1 %v2750_v46 }
 0x2f7   :  { %1472 = vmatmul.mubr.bf16.gmra.mrb[88].mxu1 %v2752_v48 }
 0x2f8   :  { %1479 = vmatprep.mubr.bf16.mxu1 %v2753_v50 }
 0x2ff   :  { %1480 = vmatmul.mubr.bf16.gmra.mrb[92].mxu1 %v2755_v51 }
 0x300   :  { %1487 = vmatprep.mubr.bf16.mxu1 %v2756_v52 }
 0x304   :  { %v2319_v4 = vpop.f32.mrb[16].mxu0 }
 0x305   :  { %v2320_v5 = vpop.f32.mrb[17].mxu0 }
 0x306   :  { %v2322_v6 = vpop.f32.mrb[18].mxu0  ;;  %v3298_v8 = vadd.f32 %v2320_v5, %v2319_v4 }
 0x307   :  { %1488 = vmatmul.mubr.bf16.gmra.mrb[96].mxu1 %v2758_v55  ;;  %v2323_v7 = vpop.f32.mrb[19].mxu0 }
 0x308   :  { %1495 = vmatprep.mubr.bf16.mxu1 %v2759_v56  ;;  %v3300_v9 = vadd.f32 %v2323_v7, %v2322_v6 }
 0x30a   :  { %v1541_v10 = vpack.c.bf16 %v3300_v9, %v3298_v8 }
 0x30c   :  { %v2325_v11 = vpop.f32.mrb[20].mxu0 }
 0x30d   :  { %v2326_v12 = vpop.f32.mrb[21].mxu0 }
 0x30e   :  { %v2328_v13 = vpop.f32.mrb[22].mxu0  ;;  %v3304_v15 = vadd.f32 %v2326_v12, %v2325_v11 }
 0x30f   :  { %1496 = vmatmul.mubr.bf16.gmra.mrb[100].mxu1 %v2761_v60  ;;  %v2329_v14 = vpop.f32.mrb[23].mxu0 }
 0x310   :  { %1503 = vmatprep.mubr.bf16.mxu1 %v2762_v62  ;;  %v3306_v16 = vadd.f32 %v2329_v14, %v2328_v13 }
 0x312   :  { %v1542_v17 = vpack.c.bf16 %v3306_v16, %v3304_v15 }
 0x314   :  { %v2331_v18 = vpop.f32.mrb[24].mxu0 }
 0x315   :  { %v2332_v19 = vpop.f32.mrb[25].mxu0 }
 0x316   :  { %v2334_v22 = vpop.f32.mrb[26].mxu0  ;;  %v3310_v24 = vadd.f32 %v2332_v19, %v2331_v18 }
 0x317   :  { %1504 = vmatmul.mubr.bf16.gmra.mrb[104].mxu1 %v2764_v1  ;;  %v2335_v25 = vpop.f32.mrb[27].mxu0 }
 0x318   :  { %1511 = vmatprep.mubr.bf16.mxu1 %v2768_v2  ;;  %v3312_v28 = vadd.f32 %v2335_v25, %v2334_v22 }
 0x31a   :  { %v1543_v30 = vpack.c.bf16 %v3312_v28, %v3310_v24 }
 0x31c   :  { %v2337_v32 = vpop.f32.mrb[28].mxu0 }
 0x31d   :  { %v2338_v34 = vpop.f32.mrb[29].mxu0 }
 0x31e   :  { %v2340_v37 = vpop.f32.mrb[30].mxu0  ;;  %v3317_v39 = vadd.f32 %v2338_v34, %v2337_v32 }
 0x31f   :  { %1512 = vmatmul.mubr.bf16.gmra.mrb[108].mxu1 %v2770_v3  ;;  %v2341_v40 = vpop.f32.mrb[31].mxu0 }
 0x320   :  { %v3319_v46 = vadd.f32 %v2341_v40, %v2340_v37 }
 0x322   :  { %v1544_v48 = vpack.c.bf16 %v3319_v46, %v3317_v39 }
 0x324   :  { %v2343_v50 = vpop.f32.mrb[32].mxu0 }
 0x325   :  { %v2344_v52 = vpop.f32.mrb[33].mxu0 }
 0x326   :  { %v2346_v55 = vpop.f32.mrb[34].mxu0  ;;  %v3324_v57 = vadd.f32 %v2344_v52, %v2343_v50 }
 0x327   :  { %v2347_v59 = vpop.f32.mrb[35].mxu0 }
 0x328   :  { %v3326_v62 = vadd.f32 %v2347_v59, %v2346_v55 }
 0x32a   :  { %v1545_v0 = vpack.c.bf16 %v3326_v62, %v3324_v57 }
 0x32c   :  { %v2349_v2 = vpop.f32.mrb[36].mxu0 }
 0x32d   :  { %v2350_v4 = vpop.f32.mrb[37].mxu0 }
 0x32e   :  { %v2352_v7 = vpop.f32.mrb[38].mxu0  ;;  %v3331_v14 = vadd.f32 %v2350_v4, %v2349_v2 }
 0x32f   :  { %v2353_v12 = vpop.f32.mrb[39].mxu0 }
 0x37a   :  { %v2431_v61 = vpop.f32.mrb[48].mxu1 }
 0x37b   :  { %v2432_v58 = vpop.f32.mrb[49].mxu1 }
 0x37c   :  { %v2433_v20 = vadd.f32 %v2432_v58, %v2431_v61  ;;  %v2434_v21 = vpop.f32.mrb[50].mxu1  ;;  %v3333_v61 = vadd.f32 %v2353_v12, %v2352_v7 }
 0x37d   :  { %v2435_v23 = vpop.f32.mrb[51].mxu1 }
 0x37e   :  { %v2436_v27 = vadd.f32 %v2435_v23, %v2434_v21  ;;  %v1546_v58 = vpack.c.bf16 %v3333_v61, %v3331_v14 }
 0x380   :  { %v1557_v29 = vpack.c.bf16 %v2436_v27, %v2433_v20  ;;  %v2355_v20 = vpop.f32.mrb[40].mxu0 }
 0x381   :  { %v2356_v22 = vpop.f32.mrb[41].mxu0 }
 0x382   :  { %v2437_v31 = vpop.f32.mrb[52].mxu1  ;;  %1589 = vrot.lane.b32.xlu1 %v1557_v29, %s2883_s1  ;;  %v2358_v27 = vpop.f32.mrb[42].mxu0 }
 0x383   :  { %v2438_v33 = vpop.f32.mrb[53].mxu1 }
 0x384   :  { %v2439_v35 = vadd.f32 %v2438_v33, %v2437_v31  ;;  %v2440_v36 = vpop.f32.mrb[54].mxu1  ;;  %v2359_v31 = vpop.f32.mrb[43].mxu0  ;;  %v3338_v33 = vadd.f32 %v2356_v22, %v2355_v20 }
 0x385   :  { %v2441_v38 = vpop.f32.mrb[55].mxu1  ;;  %v3340_v34 = vadd.f32 %v2359_v31, %v2358_v27 }
 0x386   :  { %v2442_v26 = vadd.f32 %v2441_v38, %v2440_v36  ;;  %v2361_v38 = vpop.f32.mrb[44].mxu0 }
 0x387   :  { %v1547_v36 = vpack.c.bf16 %v3340_v34, %v3338_v33 }
 0x388   :  { %v1558_v47 = vpack.c.bf16 %v2442_v26, %v2439_v35  ;;  %v2362_v26 = vpop.f32.mrb[45].mxu0 }
 0x389   :  { %v2364_v50 = vpop.f32.mrb[46].mxu0  ;;  %v3345_v52 = vadd.f32 %v2362_v26, %v2361_v38 }
 0x38a   :  { %v2443_v49 = vpop.f32.mrb[56].mxu1  ;;  %1591 = vrot.lane.b32.xlu1 %v1558_v47, %s2883_s1 }
 0x38b   :  { %v2444_v51 = vpop.f32.mrb[57].mxu1 }
 0x38c   :  { %v2445_v53 = vadd.f32 %v2444_v51, %v2443_v49  ;;  %v2446_v54 = vpop.f32.mrb[58].mxu1 }
 0x38d   :  { %v2447_v56 = vpop.f32.mrb[59].mxu1 }
 0x38e   :  { %v2448_v60 = vadd.f32 %v2447_v56, %v2446_v54 }
 0x390   :  { %v1559_v63 = vpack.c.bf16 %v2448_v60, %v2445_v53  ;;  %v2365_v53 = vpop.f32.mrb[47].mxu0 }
 0x391   :  { %v3347_v55 = vadd.f32 %v2365_v53, %v2364_v50 }
 0x392   :  { %v2449_v1 = vpop.f32.mrb[60].mxu1  ;;  %1593 = vrot.lane.b32.xlu1 %v1559_v63, %s2883_s1  ;;  %v2367_v63 = vpop.f32.mrb[48].mxu0 }
 0x393   :  { %v2450_v3 = vpop.f32.mrb[61].mxu1  ;;  %v1548_v59 = vpack.c.bf16 %v3347_v55, %v3345_v52  ;;  %v2368_v2 = vpop.f32.mrb[49].mxu0 }
 0x394   :  { %v2451_v5 = vadd.f32 %v2450_v3, %v2449_v1  ;;  %v2452_v6 = vpop.f32.mrb[62].mxu1  ;;  %v3352_v7 = vadd.f32 %v2368_v2, %v2367_v63 }
 0x395   :  { %v2453_v11 = vpop.f32.mrb[63].mxu1 }
 0x396   :  { %v2454_v13 = vadd.f32 %v2453_v11, %v2452_v6 }
 0x398   :  { %v1560_v18 = vpack.c.bf16 %v2454_v13, %v2451_v5  ;;  %v2370_v5 = vpop.f32.mrb[50].mxu0 }
 0x399   :  { %v2371_v11 = vpop.f32.mrb[51].mxu0 }
 0x39a   :  { %v2455_v19 = vpop.f32.mrb[64].mxu1  ;;  %1595 = vrot.lane.b32.xlu1 %v1560_v18, %s2883_s1  ;;  %v3354_v13 = vadd.f32 %v2371_v11, %v2370_v5 }
 0x39b   :  { %v2456_v21 = vpop.f32.mrb[65].mxu1 }
 0x39c   :  { %v2457_v23 = vadd.f32 %v2456_v21, %v2455_v19  ;;  %v2458_v25 = vpop.f32.mrb[66].mxu1  ;;  %v1549_v19 = vpack.c.bf16 %v3354_v13, %v3352_v7  ;;  %v2373_v21 = vpop.f32.mrb[52].mxu0 }
 0x39d   :  { %v2459_v29 = vpop.f32.mrb[67].mxu1 }
 0x39e   :  { %v2460_v32 = vadd.f32 %v2459_v29, %v2458_v25 }
 0x3a0   :  { %v1561_v35 = vpack.c.bf16 %v2460_v32, %v2457_v23  ;;  %v2374_v23 = vpop.f32.mrb[53].mxu0 }
 0x3a1   :  { %v2376_v29 = vpop.f32.mrb[54].mxu0  ;;  %v3359_v32 = vadd.f32 %v2374_v23, %v2373_v21 }
 0x3a2   :  { %1597 = vrot.lane.b32.xlu1 %v1561_v35, %s2883_s1  ;;  %v2461_v37 = vpop.f32.mrb[68].mxu1  ;;  %v2377_v35 = vpop.f32.mrb[55].mxu0 }
 0x3a3   :  { %v2462_v40 = vpop.f32.mrb[69].mxu1  ;;  %v3361_v38 = vadd.f32 %v2377_v35, %v2376_v29 }
 0x3a4   :  { %v2463_v47 = vadd.f32 %v2462_v40, %v2461_v37  ;;  %v2464_v49 = vpop.f32.mrb[70].mxu1 }
 0x3a5   :  { %v2465_v51 = vpop.f32.mrb[71].mxu1  ;;  %v1550_v26 = vpack.c.bf16 %v3361_v38, %v3359_v32 }
 0x3a6   :  { %v2466_v54 = vadd.f32 %v2465_v51, %v2464_v49  ;;  %v2379_v49 = vpop.f32.mrb[56].mxu0 }
 0x3a7   :  { %v2380_v51 = vpop.f32.mrb[57].mxu0 }
 0x3a8   :  { %v1562_v56 = vpack.c.bf16 %v2466_v54, %v2463_v47  ;;  %v3366_v63 = vadd.f32 %v2380_v51, %v2379_v49 }
 0x3aa   :  { %v2467_v60 = vpop.f32.mrb[72].mxu1  ;;  %1599 = vrot.lane.b32.xlu1 %v1562_v56, %s2883_s1  ;;  %v2382_v56 = vpop.f32.mrb[58].mxu0 }
 0x3ab   :  { %v2468_v1 = vpop.f32.mrb[73].mxu1 }
 0x3ac   :  { %v2469_v3 = vadd.f32 %v2468_v1, %v2467_v60  ;;  %v2470_v4 = vpop.f32.mrb[74].mxu1  ;;  %v2383_v1 = vpop.f32.mrb[59].mxu0 }
 0x3ad   :  { %v2471_v6 = vpop.f32.mrb[75].mxu1  ;;  %v2385_v11 = vpop.f32.mrb[60].mxu0 }
 0x3ae   :  { %v2472_v12 = vadd.f32 %v2471_v6, %v2470_v4 }
 0x3b0   :  { %v1563_v18 = vpack.c.bf16 %v2472_v12, %v2469_v3  ;;  %v3370_v3 = vadd.f32 %v2383_v1, %v2382_v56 }
 0x3b2   :  { %v2473_v20 = vpop.f32.mrb[76].mxu1  ;;  %1601 = vrot.lane.b32.xlu1 %v1563_v18, %s2883_s1  ;;  %v1551_v5 = vpack.c.bf16 %v3370_v3, %v3366_v63  ;;  %v2386_v18 = vpop.f32.mrb[61].mxu0 }
 0x3b3   :  { %v2474_v22 = vpop.f32.mrb[77].mxu1 }
 0x3b4   :  { %v2475_v25 = vadd.f32 %v2474_v22, %v2473_v20  ;;  %v2476_v27 = vpop.f32.mrb[78].mxu1  ;;  %v2388_v22 = vpop.f32.mrb[62].mxu0 }
 0x3b5   :  { %v2477_v31 = vpop.f32.mrb[79].mxu1 }
 0x3b6   :  { %v2478_v37 = vadd.f32 %v2477_v31, %v2476_v27  ;;  %v2389_v27 = vpop.f32.mrb[63].mxu0 }
 0x3b7   :  { %v3379_v29 = vadd.f32 %v2389_v27, %v2388_v22 }
 0x3b8   :  { %v1564_v40 = vpack.c.bf16 %v2478_v37, %v2475_v25  ;;  %v3375_v25 = vadd.f32 %v2386_v18, %v2385_v11 }
 0x3ba   :  { %v2479_v47 = vpop.f32.mrb[80].mxu1  ;;  %1603 = vrot.lane.b32.xlu1 %v1564_v40, %s2883_s1  ;;  %v1552_v35 = vpack.c.bf16 %v3379_v29, %v3375_v25  ;;  %v2391_v40 = vpop.f32.mrb[64].mxu0 }
 0x3bb   :  { %v2480_v50 = vpop.f32.mrb[81].mxu1  ;;  %v2392_v49 = vpop.f32.mrb[65].mxu0 }
 0x3bc   :  { %v2481_v53 = vadd.f32 %v2480_v50, %v2479_v47  ;;  %v2482_v54 = vpop.f32.mrb[82].mxu1 }
 0x3bd   :  { %v2483_v60 = vpop.f32.mrb[83].mxu1 }
 0x3be   :  { %v2484_v2 = vadd.f32 %v2483_v60, %v2482_v54  ;;  %1651 = vrot.lane.b32.xlu1 %v3179_v45, %s2880_s2 }
 0x3c0   :  { %v1565_v4 = vpack.c.bf16 %v2484_v2, %v2481_v53  ;;  %v2394_v53 = vpop.f32.mrb[66].mxu0 }
 0x3c1   :  { %v2395_v56 = vpop.f32.mrb[67].mxu0 }
 0x3c2   :  { %v2485_v6 = vpop.f32.mrb[84].mxu1  ;;  %1605 = vrot.lane.b32.xlu0 %v1565_v4, %s2883_s1  ;;  %v3390_v1 = vadd.f32 %v2395_v56, %v2394_v53 }
 0x3c3   :  { %v2486_v12 = vpop.f32.mrb[85].mxu1 }
 0x3c4   :  { %v2487_v20 = vadd.f32 %v2486_v12, %v2485_v6  ;;  %v2488_v21 = vpop.f32.mrb[86].mxu1  ;;  %v2397_v6 = vpop.f32.mrb[68].mxu0 }
 0x3c5   :  { %v2489_v23 = vpop.f32.mrb[87].mxu1  ;;  %v2398_v12 = vpop.f32.mrb[69].mxu0 }
 0x3c6   :  { %v2490_v45 = vadd.f32 %v2489_v23, %v2488_v21  ;;  %1647 = vrot.lane.b32.xlu0 %v3161_v41, %s2880_s2  ;;  %v3386_v41 = vadd.f32 %v2392_v49, %v2391_v40  ;;  %v2400_v21 = vpop.f32.mrb[70].mxu0 }
 0x3c7   :  { %v2401_v23 = vpop.f32.mrb[71].mxu0 }
 0x3c8   :  { %v1566_v31 = vpack.c.bf16 %v2490_v45, %v2487_v20  ;;  %v3399_v45 = vadd.f32 %v2401_v23, %v2400_v21  ;;  %v2403_v40 = vpop.f32.mrb[72].mxu0 }
 0x3c9   :  { %v2404_v49 = vpop.f32.mrb[73].mxu0 }
 0x3ca   :  { %v2491_v37 = vpop.f32.mrb[88].mxu1  ;;  %1665 = vrot.lane.b32.xlu0 %v3171_v43, %s2880_s2  ;;  %1607 = vrot.lane.b32.xlu1 %v1566_v31, %s2883_s1  ;;  %v1553_v43 = vpack.c.bf16 %v3390_v1, %v3386_v41  ;;  %v2406_v53 = vpop.f32.mrb[74].mxu0  ;;  %v3404_v56 = vadd.f32 %v2404_v49, %v2403_v40 }
 0x3cb   :  { %v2492_v47 = vpop.f32.mrb[89].mxu1 }
 0x3cc   :  { %v2493_v50 = vadd.f32 %v2492_v47, %v2491_v37  ;;  %v2494_v51 = vpop.f32.mrb[90].mxu1 }
 0x3cd   :  { %v2495_v54 = vpop.f32.mrb[91].mxu1 }
 0x3ce   :  { %v2496_v60 = vadd.f32 %v2495_v54, %v2494_v51  ;;  %1649 = vrot.lane.b32.xlu0 %v3167_v42, %s2880_s2  ;;  %v3397_v42 = vadd.f32 %v2398_v12, %v2397_v6 }
 0x3d0   :  { %v1567_v2 = vpack.c.bf16 %v2496_v60, %v2493_v50  ;;  %v2407_v60 = vpop.f32.mrb[75].mxu0 }
 0x3d2   :  { %v2497_v4 = vpop.f32.mrb[92].mxu1  ;;  %1667 = vrot.lane.b32.xlu0 %v3177_v44, %s2880_s2  ;;  %1609 = vrot.lane.b32.xlu1 %v1567_v2, %s2883_s1 }
 0x3d3   :  { %v2498_v11 = vpop.f32.mrb[93].mxu1 }
 0x3d4   :  { %v2499_v18 = vadd.f32 %v2498_v11, %v2497_v4  ;;  %v2500_v20 = vpop.f32.mrb[94].mxu1  ;;  %v3406_v4 = vadd.f32 %v2407_v60, %v2406_v53 }
 0x3d5   :  { %v2501_v22 = vpop.f32.mrb[95].mxu1 }
 0x3d6   :  { %v2502_v27 = vadd.f32 %v2501_v22, %v2500_v20  ;;  %v3606_v41 = vpack.c.bf16 %v3406_v4, %v3404_v56 }
 0x3d8   :  { %v1568_v31 = vpack.c.bf16 %v2502_v27, %v2499_v18  ;;  %v2409_v18 = vpop.f32.mrb[76].mxu0 }
 0x3d9   :  { %v2410_v21 = vpop.f32.mrb[77].mxu0 }
 0x3da   :  { %v2503_v44 = vpop.f32.mrb[96].mxu1  ;;  %1611 = vrot.lane.b32.xlu1 %v1568_v31, %s2883_s1  ;;  %v2412_v27 = vpop.f32.mrb[78].mxu0 }
 0x3db   :  { %v2504_v47 = vpop.f32.mrb[97].mxu1  ;;  %v2413_v40 = vpop.f32.mrb[79].mxu0 }
 0x3dc   :  { %v2505_v50 = vadd.f32 %v2504_v47, %v2503_v44  ;;  %v2506_v51 = vpop.f32.mrb[98].mxu1  ;;  %v3411_v44 = vadd.f32 %v2410_v21, %v2409_v18  ;;  %v3413_v49 = vadd.f32 %v2413_v40, %v2412_v27  ;;  %v1654_v21 = vpop.permute.xlu0 %1653 }
 0x3dd   :  { %v2507_v54 = vpop.f32.mrb[99].mxu1 }
 0x3de   :  { %v2508_v2 = vadd.f32 %v2507_v54, %v2506_v51 }
 0x3e0   :  { %v1569_v6 = vpack.c.bf16 %v2508_v2, %v2505_v50 }
 0x3e2   :  { %v2509_v12 = vpop.f32.mrb[100].mxu1  ;;  %1613 = vrot.lane.b32.xlu1 %v1569_v6, %s2883_s1 }
 0x3e3   :  { %v2510_v20 = vpop.f32.mrb[101].mxu1 }
 0x3e4   :  { %v2511_v22 = vadd.f32 %v2510_v20, %v2509_v12  ;;  %v2512_v23 = vpop.f32.mrb[102].mxu1 }
 0x3e5   :  { %v2513_v31 = vpop.f32.mrb[103].mxu1 }
 0x3e6   :  { %v2514_v47 = vadd.f32 %v2513_v31, %v2512_v23 }
 0x3e8   :  { %v1570_v50 = vpack.c.bf16 %v2514_v47, %v2511_v22  ;;  %v1638_v47 = vpop.permute.xlu0 %1637 }
 0x3ea   :  { %v2515_v53 = vpop.f32.mrb[104].mxu1  ;;  %1615 = vrot.lane.b32.xlu1 %v1570_v50, %s2883_s1 }
 0x3eb   :  { %v2516_v54 = vpop.f32.mrb[105].mxu1 }
 0x3ec   :  { %v2517_v60 = vadd.f32 %v2516_v54, %v2515_v53  ;;  %v2518_v2 = vpop.f32.mrb[106].mxu1  ;;  %v1656_v50 = vpop.permute.xlu0 %1655 }
 0x3ed   :  { %v2519_v6 = vpop.f32.mrb[107].mxu1 }
 0x3ee   :  { %v2520_v12 = vadd.f32 %v2519_v6, %v2518_v2 }
 0x3f0   :  { %v1571_v20 = vpack.c.bf16 %v2520_v12, %v2517_v60  ;;  %v1640_v51 = vpop.permute.xlu0 %1639 }
 0x3f2   :  { %v2521_v11 = vpop.f32.mrb[108].mxu1  ;;  %1617 = vrot.lane.b32.xlu1 %v1571_v20, %s2883_s1 }
 0x3f3   :  { %v2522_v18 = vpop.f32.mrb[109].mxu1 }
 0x3f4   :  { %v2523_v23 = vadd.f32 %v2522_v18, %v2521_v11  ;;  %v2524_v27 = vpop.f32.mrb[110].mxu1  ;;  %v1658_v53 = vpop.permute.xlu0 %1657 }
 0x3f5   :  { %v2525_v22 = vpop.f32.mrb[111].mxu1  ;;  %v1590_v37 = vpop.permute.xlu1 %1589 }
 0x3f6   :  { %v2526_v31 = vadd.f32 %v2525_v22, %v2524_v27  ;;  %v1672_v60 = vsel %vm195_vm0, %v1541_v10, %v1590_v37 }
 0x3f7   :  { %v1720_v11 = vsel %vm701_vm1, %v1672_v60, %v1638_v47 }
 0x3f8   :  { %v1572_v40 = vpack.c.bf16 %v2526_v31, %v2523_v23  ;;  %v1642_v54 = vpop.permute.xlu0 %1641 }
 0x3fa   :  { %1619 = vrot.lane.b32.xlu1 %v1572_v40, %s2883_s1 }
 0x3fc   :  { %v1660_v2 = vpop.permute.xlu0 %1659  ;;  %v1592_v6 = vpop.permute.xlu1 %1591 }
 0x3fd   :  { %v1675_v12 = vsel %vm195_vm0, %v1542_v17, %v1592_v6 }
 0x3fe   :  { %v1723_v23 = vsel %vm701_vm1, %v1675_v12, %v1640_v51 }
 0x400   :  { %v1644_v20 = vpop.permute.xlu0 %1643 }
 0x404   :  { %v1594_v18 = vpop.permute.xlu1 %1593  ;;  %v1662_v10 = vpop.permute.xlu0 %1661 }
 0x405   :  { %v1678_v8 = vsel %vm195_vm0, %v1543_v30, %v1594_v18 }
 0x406   :  { %v1726_v37 = vsel %vm701_vm1, %v1678_v8, %v1642_v54 }
 0x408   :  { %v1646_v28 = vpop.permute.xlu0 %1645 }
 0x40c   :  { %v1596_v9 = vpop.permute.xlu1 %1595  ;;  %v1664_v22 = vpop.permute.xlu0 %1663 }
 0x40d   :  { %v1681_v15 = vsel %vm195_vm0, %v1544_v48, %v1596_v9 }
 0x40e   :  { %v1729_v17 = vsel %vm701_vm1, %v1681_v15, %v1644_v20 }
 0x414   :  { %v1598_v16 = vpop.permute.xlu1 %1597 }
 0x415   :  { %v1684_v24 = vsel %vm195_vm0, %v1545_v0, %v1598_v16 }
 0x416   :  { %v1732_v51 = vsel %vm701_vm1, %v1684_v24, %v1646_v28 }
 0x41c   :  { %v1600_v30 = vpop.permute.xlu1 %1599 }
 0x41d   :  { %1783 = vxpose.xlu1.c.b16.start [1/8] %v1720_v11, 128  ;;  %v1687_v57 = vsel %vm195_vm0, %v1546_v58, %v1600_v30 }
 0x421   :  { %1784 = vxpose.xlu1.c.b16.cont [2/8] %v1723_v23, 128 }
 0x424   :  { %v1602_v27 = vpop.permute.xlu1 %1601 }
 0x425   :  { %1785 = vxpose.xlu1.c.b16.cont [3/8] %v1726_v37, 128  ;;  %v1690_v14 = vsel %vm195_vm0, %v1547_v36, %v1602_v27 }
 0x429   :  { %1786 = vxpose.xlu1.c.b16.cont [4/8] %v1729_v17, 128 }
 0x42c   :  { %v1604_v39 = vpop.permute.xlu1 %1603 }
 0x42d   :  { %1787 = vxpose.xlu1.c.b16.cont [5/8] %v1732_v51, 128 }
 0x430   :  { %v1652_v62 = vpop.permute.xlu1 %1651 }
 0x434   :  { %v1606_v46 = vpop.permute.xlu0 %1605 }
 0x435   :  { %v1696_v48 = vsel %vm195_vm0, %v1549_v19, %v1606_v46  ;;  %v1693_v19 = vsel %vm195_vm0, %v1548_v59, %v1604_v39 }
 0x436   :  { %v1744_v31 = vsel %vm701_vm1, %v1696_v48, %v1654_v21  ;;  %v1741_v33 = vsel %vm701_vm1, %v1693_v19, %v1652_v62 }
 0x437   :  { %1799 = vxpose.xlu0.c.b16.start [1/8] %v1744_v31, 128  ;;  %2527 = vmatprep.subr.bf16.mxu0 %v1744_v31 }
 0x438   :  { %v1648_v0 = vpop.permute.xlu0 %1647  ;;  %2528 = vmatpush3.bf16.msra.mxu0 %v1720_v11 }
 0x439   :  { %v1735_v40 = vsel %vm701_vm1, %v1687_v57, %v1648_v0 }
 0x43a   :  { %1788 = vxpose.xlu1.c.b16.cont [6/8] %v1735_v40, 128 }
 0x43c   :  { %v1608_v47 = vpop.permute.xlu1 %1607  ;;  %v1666_v54 = vpop.permute.xlu0 %1665 }
 0x43d   :  { %v1699_v7 = vsel %vm195_vm0, %v1550_v26, %v1608_v47 }
 0x43e   :  { %v1747_v13 = vsel %vm701_vm1, %v1699_v7, %v1656_v50 }
 0x43f   :  { %1800 = vxpose.xlu0.c.b16.cont [2/8] %v1747_v13, 128  ;;  %2529 = vmatprep.subr.bf16.mxu0 %v1747_v13 }
 0x440   :  { %v1650_v61 = vpop.permute.xlu0 %1649  ;;  %2530 = vmatpush3.bf16.msra.mxu0 %v1723_v23 }
 0x441   :  { %v1738_v58 = vsel %vm701_vm1, %v1690_v14, %v1650_v61 }
 0x442   :  { %1789 = vxpose.xlu1.c.b16.cont [7/8] %v1738_v58, 128 }
 0x444   :  { %v1610_v32 = vpop.permute.xlu1 %1609 }
 0x445   :  { %v1702_v38 = vsel %vm195_vm0, %v1551_v5, %v1610_v32  ;;  %v3605_v5 = vpack.c.bf16 %v3399_v45, %v3397_v42  ;;  %v1668_v42 = vpop.permute.xlu0 %1667  ;;  %v3607_v45 = vpack.c.bf16 %v3413_v49, %v3411_v44 }
 0x446   :  { %1790 = vxpose.xlu1.c.b16.end [8/8] %v1741_v33, 128  ;;  %v1750_v34 = vsel %vm701_vm1, %v1702_v38, %v1658_v53 }
 0x447   :  { %1801 = vxpose.xlu0.c.b16.cont [3/8] %v1750_v34, 128  ;;  %2531 = vmatprep.subr.bf16.mxu0 %v1750_v34 }
 0x448   :  { %2532 = vmatpush3.bf16.msra.mxu0 %v1726_v37 }
 0x44c   :  { %v1612_v36 = vpop.permute.xlu1 %1611 }
 0x44d   :  { %v1705_v52 = vsel %vm195_vm0, %v1552_v35, %v1612_v36 }
 0x44e   :  { %v1753_v55 = vsel %vm701_vm1, %v1705_v52, %v1660_v2 }
 0x44f   :  { %1802 = vxpose.xlu0.c.b16.cont [4/8] %v1753_v55, 128  ;;  %2533 = vmatprep.subr.bf16.mxu0 %v1753_v55 }
 0x450   :  { %2534 = vmatpush3.bf16.msra.mxu0 %v1729_v17 }
 0x454   :  { %v1614_v59 = vpop.permute.xlu1 %1613 }
 0x455   :  { %v1708_v26 = vsel %vm195_vm0, %v1553_v43, %v1614_v59 }
 0x456   :  { %v1756_v63 = vsel %vm701_vm1, %v1708_v26, %v1662_v10 }
 0x457   :  { %1803 = vxpose.xlu0.c.b16.cont [5/8] %v1756_v63, 128  ;;  %2535 = vmatprep.subr.bf16.mxu0 %v1756_v63 }
 0x458   :  { %2536 = vmatpush3.bf16.msra.mxu0 %v1732_v51 }
 0x45c   :  { %v1616_v3 = vpop.permute.xlu1 %1615 }
 0x45d   :  { %v1711_v25 = vsel %vm195_vm0, %v3605_v5, %v1616_v3 }
 0x45e   :  { %v1759_v29 = vsel %vm701_vm1, %v1711_v25, %v1664_v22 }
 0x45f   :  { %1804 = vxpose.xlu0.c.b16.cont [6/8] %v1759_v29, 128  ;;  %2537 = vmatprep.subr.bf16.mxu0 %v1759_v29 }
 0x460   :  { %2538 = vmatpush3.bf16.msra.mxu0 %v1735_v40 }
 0x464   :  { %v1618_v35 = vpop.permute.xlu1 %1617 }
 0x465   :  { %v1714_v1 = vsel %vm195_vm0, %v3606_v41, %v1618_v35 }
 0x466   :  { %v1762_v43 = vsel %vm701_vm1, %v1714_v1, %v1666_v54  ;;  %v1955_v54 = vlaneseq }
 0x467   :  { %1805 = vxpose.xlu0.c.b16.cont [7/8] %v1762_v43, 128  ;;  %2539 = vmatprep.subr.bf16.mxu0 %v1762_v43 }
 0x468   :  { %2540 = vmatpush3.bf16.msra.mxu0 %v1738_v58  ;;  %v3504_v32 = vshrl.u32 %v1955_v54, 7  ;;  %v3507_v52 = vand.u32 127, %v1955_v54 }
 0x46a   :  { %v3511_v3 = vadd.s32 8, %v3504_v32  ;;  %vm1962_vm2 = vcmp.eq.s32.totalorder %v3504_v32, %v3507_v52 }
 0x46c   :  { %v1620_v21 = vpop.permute.xlu1 %1619  ;;  %vm1963_vm3 = vcmp.eq.s32.totalorder %v3511_v3, %v3507_v52 }
 0x46d   :  { %v1717_v50 = vsel %vm195_vm0, %v3607_v45, %v1620_v21 }
 0x46e   :  { %v1765_v53 = vsel %vm701_vm1, %v1717_v50, %v1668_v42 }
 0x46f   :  { %1806 = vxpose.xlu0.c.b16.end [8/8] %v1765_v53, 128  ;;  %2541 = vmatprep.subr.bf16.mxu0 %v1765_v53 }
 0x470   :  { %2542 = vmatpush3.bf16.msra.mxu0 %v1741_v33 }
 0x490   :  { %v1791_v56 = vpop.trf.xlu1 }
 0x494   :  { %v1792_v60 = vpop.trf.xlu1 }
 0x498   :  { %v1793_v11 = vpop.trf.xlu1 }
 0x49c   :  { %v1794_v44 = vpop.trf.xlu1 }
 0x4a0   :  { %v1795_v20 = vpop.trf.xlu1 }
 0x4a4   :  { %v1796_v23 = vpop.trf.xlu1 }
 0x4a8   :  { %v1797_v9 = vpop.trf.xlu1 }
 0x4ac   :  { %v1798_v37 = vpop.trf.xlu1 }
 0x4b9   :  { %v1807_v4 = vpop.trf.xlu0 }
 0x4ba   :  { %1847 = vmatprep.mubr.bf16.mxu0 %v1807_v4  ;;  %v3524_v4 = vadd.s32 16, %v3504_v32 }
 0x4bb   :  { %1848 = vmatmul.mubr.bf16.vlgmr.msra.gmra.mrb[80].mxu0 %v1791_v56 }
 0x4bc   :  { %vm1964_vm4 = vcmp.eq.s32.totalorder %v3524_v4, %v3507_v52 }
 0x4bd   :  { %v1808_v2 = vpop.trf.xlu0 }
 0x4be   :  { %1855 = vmatprep.mubr.bf16.mxu0 %v1808_v2 }
 0x4c1   :  { %v1809_v6 = vpop.trf.xlu0 }
 0x4c3   :  { %1856 = vmatmul.mubr.bf16.gmra.mrb[84].mxu0 %v1792_v60 }
 0x4c4   :  { %1863 = vmatprep.mubr.bf16.mxu0 %v1809_v6 }
 0x4c5   :  { %v1810_v12 = vpop.trf.xlu0 }
 0x4c9   :  { %v1811_v49 = vpop.trf.xlu0 }
 0x4cb   :  { %1864 = vmatmul.mubr.bf16.gmra.mrb[88].mxu0 %v1793_v11 }
 0x4cc   :  { %1871 = vmatprep.mubr.bf16.mxu0 %v1810_v12  ;;  %v3531_v12 = vadd.s32 24, %v3504_v32 }
 0x4cd   :  { %v1812_v18 = vpop.trf.xlu0 }
 0x4ce   :  { %vm1965_vm5 = vcmp.eq.s32.totalorder %v3531_v12, %v3507_v52 }
 0x4d1   :  { %v1813_v8 = vpop.trf.xlu0 }
 0x4d3   :  { %1872 = vmatmul.mubr.bf16.gmra.mrb[92].mxu0 %v1794_v44 }
 0x4d4   :  { %1879 = vmatprep.mubr.bf16.mxu0 %v1811_v49 }
 0x4d5   :  { %v1814_v10 = vpop.trf.xlu0 }
 0x4db   :  { %1880 = vmatmul.mubr.bf16.gmra.mrb[96].mxu0 %v1795_v20 }
 0x4dc   :  { %1887 = vmatprep.mubr.bf16.mxu0 %v1812_v18 }
 0x4e3   :  { %1888 = vmatmul.mubr.bf16.gmra.mrb[100].mxu0 %v1796_v23 }
 0x4e4   :  { %1895 = vmatprep.mubr.bf16.mxu0 %v1813_v8 }
 0x4eb   :  { %1896 = vmatmul.mubr.bf16.gmra.mrb[104].mxu0 %v1797_v9 }
 0x4ec   :  { %1903 = vmatprep.mubr.bf16.mxu0 %v1814_v10 }
 0x4f3   :  { %1904 = vmatmul.mubr.bf16.gmra.mrb[108].mxu0 %v1798_v37 }
 0x58e   :  { %v2543_v15 = vpop.f32.mrb[80].mxu0 }
 0x58f   :  { %v2544_v16 = vpop.f32.mrb[81].mxu0 }
 0x590   :  { %v2545_v17 = vadd.f32 %v2544_v16, %v2543_v15  ;;  %v2546_v24 = vpop.f32.mrb[82].mxu0 }
 0x591   :  { %v2547_v28 = vpop.f32.mrb[83].mxu0 }
 0x592   :  { %v2548_v30 = vadd.f32 %v2547_v28, %v2546_v24  ;;  %v2257_v51 = vadd.f32 -1.0, %v2545_v17  ;;  %v2010_v39 = vmul.f32 %v2545_v17, %v2545_v17 }
 0x594   :  { %v2006_v27 = vmul.f32 %v2257_v51, %v2257_v51  ;;  %v2258_v22 = vadd.f32 -1.0, %v2548_v30  ;;  %v2011_v31 = vmul.f32 %v2548_v30, %v2548_v30  ;;  %v2014_v40 = vmul.f32 0.0051, %v2010_v39 }
 0x596   :  { %v2549_v46 = vpop.f32.mrb[84].mxu0  ;;  %2022 = vrot.lane.b32.xlu0 %v2006_v27, %s2880_s2  ;;  %v2007_v48 = vmul.f32 %v2258_v22, %v2258_v22  ;;  %v2015_v13 = vmul.f32 0.0051, %v2011_v31 }
 0x597   :  { %v2550_v57 = vpop.f32.mrb[85].mxu0 }
 0x598   :  { %v2551_v62 = vadd.f32 %v2550_v57, %v2549_v46  ;;  %2024 = vrot.lane.b32.xlu1 %v2007_v48, %s2880_s2  ;;  %v2552_v0 = vpop.f32.mrb[86].mxu0 }
 0x599   :  { %v2553_v47 = vpop.f32.mrb[87].mxu0 }
 0x59a   :  { %2038 = vrot.lane.b32.xlu0 %v2014_v40, %s2880_s2  ;;  %v2554_v7 = vadd.f32 %v2553_v47, %v2552_v0  ;;  %v2259_v14 = vadd.f32 -1.0, %v2551_v62  ;;  %v2012_v61 = vmul.f32 %v2551_v62, %v2551_v62 }
 0x59c   :  { %2040 = vrot.lane.b32.xlu1 %v2015_v13, %s2880_s2  ;;  %v2008_v58 = vmul.f32 %v2259_v14, %v2259_v14  ;;  %v2260_v19 = vadd.f32 -1.0, %v2554_v7  ;;  %v2016_v33 = vmul.f32 0.0051, %v2012_v61  ;;  %v2013_v34 = vmul.f32 %v2554_v7, %v2554_v7 }
 0x59e   :  { %v2555_v38 = vpop.f32.mrb[88].mxu0  ;;  %2026 = vrot.lane.b32.xlu0 %v2008_v58, %s2880_s2  ;;  %v2009_v26 = vmul.f32 %v2260_v19, %v2260_v19  ;;  %v2017_v35 = vmul.f32 0.0051, %v2013_v34 }
 0x59f   :  { %v2556_v36 = vpop.f32.mrb[89].mxu0 }
 0x5a0   :  { %v2557_v55 = vadd.f32 %v2556_v36, %v2555_v38  ;;  %v2558_v59 = vpop.f32.mrb[90].mxu0  ;;  %2042 = vrot.lane.b32.xlu1 %v2016_v33, %s2880_s2 }
 0x5a1   :  { %v2559_v63 = vpop.f32.mrb[91].mxu0 }
 0x5a2   :  { %v2253_v5 = vadd.f32 -1.0, %v2557_v55  ;;  %v1974_v25 = vmul.f32 %v2557_v55, %v2557_v55  ;;  %v2560_v29 = vadd.f32 %v2559_v63, %v2558_v59  ;;  %2028 = vrot.lane.b32.xlu0 %v2009_v26, %s2880_s2 }
 0x5a4   :  { %v1970_v41 = vmul.f32 %v2253_v5, %v2253_v5  ;;  %v1978_v1 = vmul.f32 0.0051, %v1974_v25  ;;  %v2254_v43 = vadd.f32 -1.0, %v2560_v29  ;;  %v1975_v21 = vmul.f32 %v2560_v29, %v2560_v29  ;;  %2044 = vrot.lane.b32.xlu1 %v2017_v35, %s2880_s2 }
 0x5a6   :  { %v1971_v42 = vmul.f32 %v2254_v43, %v2254_v43  ;;  %v1979_v45 = vmul.f32 0.0051, %v1975_v21  ;;  %v2561_v50 = vpop.f32.mrb[92].mxu0  ;;  %2076 = vrot.lane.b32.xlu0 %v1970_v41, %s2883_s1  ;;  %v1982_v53 = vsel %vm1962_vm2, %v1970_v41, %v1978_v1 }
 0x5a7   :  { %v2562_v56 = vpop.f32.mrb[93].mxu0  ;;  %v1986_v44 = vsel %vm195_vm0, %v1982_v53, 0.0 }
 0x5a8   :  { %v2563_v2 = vadd.f32 %v2562_v56, %v2561_v50  ;;  %2078 = vrot.lane.b32.xlu1 %v1971_v42, %s2883_s1  ;;  %v2564_v60 = vpop.f32.mrb[94].mxu0  ;;  %v1983_v6 = vsel %vm1963_vm3, %v1971_v42, %v1979_v45 }
 0x5a9   :  { %v2565_v11 = vpop.f32.mrb[95].mxu0  ;;  %v1987_v49 = vsel %vm195_vm0, %v1983_v6, 0.0 }
 0x5aa   :  { %v2255_v20 = vadd.f32 -1.0, %v2563_v2  ;;  %v1976_v18 = vmul.f32 %v2563_v2, %v2563_v2  ;;  %2092 = vrot.lane.b32.xlu0 %v1978_v1, %s2883_s1  ;;  %v2566_v23 = vadd.f32 %v2565_v11, %v2564_v60  ;;  %v1988_v8 = vadd.f32 %v1987_v49, %v1986_v44 }
 0x5ac   :  { %v1972_v9 = vmul.f32 %v2255_v20, %v2255_v20  ;;  %v1980_v10 = vmul.f32 0.0051, %v1976_v18  ;;  %v2256_v37 = vadd.f32 -1.0, %v2566_v23  ;;  %v1977_v15 = vmul.f32 %v2566_v23, %v2566_v23  ;;  %2094 = vrot.lane.b32.xlu1 %v1979_v45, %s2883_s1 }
 0x5ae   :  { %v1973_v16 = vmul.f32 %v2256_v37, %v2256_v37  ;;  %v1981_v17 = vmul.f32 0.0051, %v1977_v15  ;;  %2080 = vrot.lane.b32.xlu0 %v1972_v9, %s2883_s1  ;;  %v1984_v24 = vsel %vm1964_vm4, %v1972_v9, %v1980_v10  ;;  %v2567_v45 = vpop.f32.mrb[96].mxu0 }
 0x5af   :  { %v1989_v28 = vsel %vm195_vm0, %v1984_v24, 0.0  ;;  %v2568_v53 = vpop.f32.mrb[97].mxu0 }
 0x5b0   :  { %2096 = vrot.lane.b32.xlu1 %v1980_v10, %s2883_s1  ;;  %v1985_v30 = vsel %vm1965_vm5, %v1973_v16, %v1981_v17  ;;  %v1990_v51 = vadd.f32 %v1989_v28, %v1988_v8  ;;  %v2570_v2 = vpop.f32.mrb[98].mxu0 }
 0x5b1   :  { %v1991_v27 = vsel %vm195_vm0, %v1985_v30, 0.0  ;;  %v2571_v4 = vpop.f32.mrb[99].mxu0 }
 0x5b2   :  { %2082 = vrot.lane.b32.xlu0 %v1973_v16, %s2883_s1  ;;  %v1992_v22 = vadd.f32 %v1991_v27, %v1990_v51 }
 0x5b4   :  { %2098 = vrot.lane.b32.xlu1 %v1981_v17, %s2883_s1 }
 0x5b6   :  { %v2573_v6 = vpop.f32.mrb[100].mxu0 }
 0x5b7   :  { %v2574_v11 = vpop.f32.mrb[101].mxu0 }
 0x5b8   :  { %v2576_v44 = vpop.f32.mrb[102].mxu0 }
 0x5b9   :  { %v2577_v49 = vpop.f32.mrb[103].mxu0 }
 0x5be   :  { %v2579_v20 = vpop.f32.mrb[104].mxu0 }
 0x5bf   :  { %v2580_v18 = vpop.f32.mrb[105].mxu0 }
 0x5c0   :  { %v2582_v23 = vpop.f32.mrb[106].mxu0 }
 0x5c1   :  { %v2583_v8 = vpop.f32.mrb[107].mxu0 }
 0x5c6   :  { %v2585_v9 = vpop.f32.mrb[108].mxu0 }
 0x5c7   :  { %v2586_v10 = vpop.f32.mrb[109].mxu0 }
 0x5c8   :  { %v2588_v52 = vpop.f32.mrb[110].mxu0 }
 0x5c9   :  { %v2589_v12 = vpop.f32.mrb[111].mxu0 }
 0x5d1   :  { %1993 = vadd.xlane.f32.xlu0 %v1992_v22 }
 0x608   :  { %v2023_v39 = vpop.permute.xlu0 %2022 }
 0x60a   :  { %v2025_v46 = vpop.permute.xlu1 %2024 }
 0x60c   :  { %v2039_v48 = vpop.permute.xlu0 %2038 }
 0x60d   :  { %v2050_v0 = vsel %vm1962_vm2, %v2023_v39, %v2039_v48 }
 0x60e   :  { %v2041_v31 = vpop.permute.xlu1 %2040  ;;  %v2054_v7 = vsel %vm195_vm0, %v2050_v0, 0.0 }
 0x60f   :  { %v2051_v57 = vsel %vm1963_vm3, %v2025_v46, %v2041_v31 }
 0x610   :  { %v2027_v62 = vpop.permute.xlu0 %2026  ;;  %v2055_v40 = vsel %vm195_vm0, %v2051_v57, 0.0 }
 0x611   :  { %v2056_v61 = vadd.f32 %v2055_v40, %v2054_v7 }
 0x612   :  { %v2043_v47 = vpop.permute.xlu1 %2042 }
 0x613   :  { %v2052_v54 = vsel %vm1964_vm4, %v2027_v62, %v2043_v47 }
 0x614   :  { %v2057_v13 = vsel %vm195_vm0, %v2052_v54, 0.0  ;;  %v2029_v14 = vpop.permute.xlu0 %2028 }
 0x615   :  { %v2058_v38 = vadd.f32 %v2057_v13, %v2056_v61 }
 0x616   :  { %v2045_v58 = vpop.permute.xlu1 %2044 }
 0x617   :  { %v2053_v19 = vsel %vm1965_vm5, %v2029_v14, %v2045_v58 }
 0x618   :  { %v2077_v33 = vpop.permute.xlu0 %2076  ;;  %v2059_v34 = vsel %vm195_vm0, %v2053_v19, 0.0 }
 0x619   :  { %v2060_v36 = vadd.f32 %v2059_v34, %v2058_v38 }
 0x61a   :  { %v2079_v55 = vpop.permute.xlu1 %2078 }
 0x61b   :  { %2061 = vadd.xlane.f32.xlu1 %v2060_v36 }
 0x61c   :  { %v2093_v59 = vpop.permute.xlu0 %2092 }
 0x61d   :  { %v2104_v25 = vsel %vm1962_vm2, %v2077_v33, %v2093_v59 }
 0x61e   :  { %v2095_v26 = vpop.permute.xlu1 %2094  ;;  %v2108_v1 = vsel %vm195_vm0, %v2104_v25, 0.0 }
 0x61f   :  { %v2105_v63 = vsel %vm1963_vm3, %v2079_v55, %v2095_v26 }
 0x620   :  { %v2081_v5 = vpop.permute.xlu0 %2080  ;;  %v2109_v29 = vsel %vm195_vm0, %v2105_v63, 0.0 }
 0x621   :  { %v2110_v21 = vadd.f32 %v2109_v29, %v2108_v1 }
 0x622   :  { %v2097_v35 = vpop.permute.xlu1 %2096 }
 0x623   :  { %v2106_v41 = vsel %vm1964_vm4, %v2081_v5, %v2097_v35 }
 0x624   :  { %v2111_v43 = vsel %vm195_vm0, %v2106_v41, 0.0  ;;  %v2083_v42 = vpop.permute.xlu0 %2082 }
 0x625   :  { %v2112_v50 = vadd.f32 %v2111_v43, %v2110_v21 }
 0x626   :  { %v2099_v3 = vpop.permute.xlu1 %2098 }
 0x627   :  { %v2107_v32 = vsel %vm1965_vm5, %v2083_v42, %v2099_v3 }
 0x628   :  { %v2113_v56 = vsel %vm195_vm0, %v2107_v32, 0.0 }
 0x629   :  { %v2114_v60 = vadd.f32 %v2113_v56, %v2112_v50 }
 0x62b   :  { %2115 = vadd.xlane.f32.xlu0 %v2114_v60 }
 0x65e   :  { %v1994_v37 = vpop.xlane.xlu0 %1993 }
 0x65f   :  { %v1995_v15 = vrot.slane %v1994_v37, 4 }
 0x661   :  { %v1996_v16 = vadd.f32 %v1995_v15, %v1994_v37 }
 0x663   :  { %v1997_v17 = vrot.slane %v1996_v16, 2 }
 0x665   :  { %v1998_v24 = vadd.f32 %v1997_v17, %v1996_v16 }
 0x667   :  { %v1999_v28 = vrot.slane %v1998_v24, 1 }
 0x669   :  { %v2000_v30 = vadd.f32 %v1999_v28, %v1998_v24 }
 0x66b   :  { %2679 = vpush %v2000_v30 }
 0x69c   :  { %s2680_s2 = spop %2679 }
 0x6a8   :  { %v2062_v51 = vpop.xlane.xlu1 %2061 }
 0x6a9   :  { %v2063_v27 = vrot.slane %v2062_v51, 4 }
 0x6ab   :  { %v2064_v22 = vadd.f32 %v2063_v27, %v2062_v51 }
 0x6ad   :  { %v2065_v39 = vrot.slane %v2064_v22, 2 }
 0x6af   :  { %v2066_v46 = vadd.f32 %v2065_v39, %v2064_v22 }
 0x6b1   :  { %v2067_v48 = vrot.slane %v2066_v46, 1 }
 0x6b3   :  { %v2068_v31 = vadd.f32 %v2067_v48, %v2066_v46 }
 0x6b5   :  { %2681 = vpush %v2068_v31 }
 0x6b8   :  { %v2116_v57 = vpop.xlane.xlu0 %2115 }
 0x6b9   :  { %v2117_v62 = vrot.slane %v2116_v57, 4 }
 0x6bb   :  { %v2118_v0 = vadd.f32 %v2117_v62, %v2116_v57 }
 0x6bd   :  { %v2119_v40 = vrot.slane %v2118_v0, 2 }
 0x6bf   :  { %v2120_v47 = vadd.f32 %v2119_v40, %v2118_v0 }
 0x6c1   :  { %v2121_v54 = vrot.slane %v2120_v47, 1 }
 0x6c3   :  { %v2122_v7 = vadd.f32 %v2121_v54, %v2120_v47 }
 0x6c5   :  { %2683 = vpush %v2122_v7 }
 0x6e6   :  { %s2682_s13 = spop %2681 }
 0x6e7   :  { %s2070_s14 = smul.f32 0.5, %s2682_s13 }
 0x6e9   :  { %s2071_s16 = sadd.f32 %s2680_s2, %s2070_s14 }
 0x6f6   :  { %s2684_s15 = spop %2683 }
 0x6f7   :  { %s2124_s17 = smul.f32 0.3, %s2684_s15 }
 0x6f9   :  { %s2125_s18 = sadd.f32 %s2124_s17, %s2071_s16 }
 0x6fb   :  { %2127 = sst [smem:[#allocation9]] %s2125_s18 }
 0x6fc   :  { %2869 = shalt.err (!%p2866_p4)
}
 0x6fd   :  { %s2884_s0 = smov [#allocation9]  }
 0x6fe   :  { %2135 = dma.smem_to_hbm %s2884_s0, 16, %s3604_s7, [#allocation6]  }
 0x6ff   :  { %2874 = dma.done.wait [#allocation6], 16  }
 0x700   :  { %2875 = vsyncadd [#allocation6], 4294967280 }
 0x701   :  { %2139 = sfence }
 0x702   :  { %2140 = vsyncpa [#allocation5], 1 }
 0x703   :  { %2141 = vsyncpa [#allocation8], 1 }
 0x704   :  { %2142 = vsyncpa [#allocation6], 1 }

</bundles_post_ra>
